<compile_context>
chip_gen: v6e
topology: v6e:2x2x1
jax: 0.10.0
libtpu: 0.0.40
codegen_flags: <defaults>
</compile_context>

<pallas_src>
import functools

import jax
import jax.numpy as jnp
from jax.experimental import pallas as pl
from jax.experimental.pallas import tpu as pltpu

# ---------------------------------------------------------------------------
# Model definition (dims from the PyTorch module)
# ---------------------------------------------------------------------------
DIMS = [403, 300, 200, 100, 50, 25, 12, 1]          # linear layer in/out chain
ACTS = ["relu", "relu", "relu", "relu6", "relu6", "relu6", "sigmoid"]
BN_EPS = 1e-5
LANE = 128
SUBLANE = 8
OUT_PAD = 8          # sublane-friendly narrow output width (column 0 holds the logit)
TB_MAX = 2048        # max batch tile; ~20 MiB working set incl. double buffering


def _round_up(x, m):
    return (x + m - 1) // m * m


def _cdiv(a, b):
    return -(-a // b)


PAD_DIMS = [_round_up(d, LANE) for d in DIMS]        # 512,384,256,128,128,128,128,128
IN_DIM = DIMS[0]                                     # 403
IN_PAD = PAD_DIMS[0]                                 # 512


# ---------------------------------------------------------------------------
# Pallas kernel: full MLP forward for one batch tile
# ---------------------------------------------------------------------------
def mlp_kernel(x_ref,
               w1, b1, w2, b2, w3, b3, w4, b4, w5, b5, w6, b6, w7, b7,
               out_ref, x_scr):
    tb = x_scr.shape[0]

    # bf16 cast + zero-pad the (tb, 403) f32 input tile to 512 lanes (K of layer 1).
    # Tail lanes are re-zeroed every tile (scratch is per-core; never trust its contents).
    x_scr[:, :IN_DIM] = x_ref[...].astype(jnp.bfloat16)
    x_scr[:, IN_DIM:] = jnp.zeros((tb, IN_PAD - IN_DIM), jnp.bfloat16)

    def layer(h_bf16, w_ref, b_ref):
        # bf16 x bf16 on the MXU with f32 accumulation; f32 bias add on the VPU.
        return jnp.dot(h_bf16, w_ref[...],
                       preferred_element_type=jnp.float32) + b_ref[...]

    h = x_scr[...]                                                  # (tb, 512) bf16

    # BN already folded into W/b; Dropout = identity in eval mode.
    h = jnp.maximum(layer(h, w1, b1), 0.0).astype(jnp.bfloat16)     # ReLU
    h = jnp.maximum(layer(h, w2, b2), 0.0).astype(jnp.bfloat16)     # ReLU
    h = jnp.maximum(layer(h, w3, b3), 0.0).astype(jnp.bfloat16)     # ReLU
    h = jnp.clip(layer(h, w4, b4), 0.0, 6.0).astype(jnp.bfloat16)   # ReLU6
    h = jnp.clip(layer(h, w5, b5), 0.0, 6.0).astype(jnp.bfloat16)   # ReLU6
    h = jnp.clip(layer(h, w6, b6), 0.0, 6.0).astype(jnp.bfloat16)   # ReLU6

    h = layer(h, w7, b7)                    # (tb, 128) f32; only column 0 is real
    h = h[:, :OUT_PAD]                      # (tb, 8): 16x fewer EUP / store lanes
    # Exact sigmoid: exp on the EUP, exact divide (inf-safe: exp(-h)->inf => out->0).
    out_ref[...] = 1.0 / (1.0 + jnp.exp(-h))


# ---------------------------------------------------------------------------
# Batch tiling: minimal padding, >=2 even grid steps for v7x's two TensorCores
# ---------------------------------------------------------------------------
def _choose_tiling(batch):
    rows = _round_up(max(batch, SUBLANE), SUBLANE)   # kernel-visible batch rows
    n_tiles = _cdiv(rows, TB_MAX)
    if rows >= 2 * SUBLANE:
        n_tiles = max(n_tiles, 2)                    # keep both v7x TCs busy
        if n_tiles % 2:
            n_tiles += 1                             # even split across the 2 cores
    tb = _round_up(_cdiv(rows, n_tiles), SUBLANE)
    n_tiles = _cdiv(rows, tb)                        # recompute after rounding
    return rows, tb, n_tiles


# ---------------------------------------------------------------------------
# Wrapper
# ---------------------------------------------------------------------------
@functools.partial(jax.jit, static_argnames=("batch",))
def cnn_network_forward(x, linear_params, batch):
    """x: (batch, 1, 403) float32. Returns (batch, 1, 1) float32 (matches PyTorch)."""
    rows, tb, n_tiles = _choose_tiling(batch)

    x2d = x.reshape(batch, IN_DIM)                   # (N,1,403)->(N,403): free
    if rows != batch:                                # copy only when batch % 8 != 0
        x2d = jnp.pad(x2d, ((0, rows - batch), (0, 0)))

    flat_args = [x2d]
    # x stays f32; last dim = full array dim (403) is a legal block shape.
    in_specs = [pl.BlockSpec((tb, IN_DIM), lambda i: (i, 0))]
    for layer_idx, (w, b) in enumerate(linear_params):
        flat_args += [w, b]
        # Constant index_maps -> weights/biases DMA'd once and kept resident in VMEM.
        in_specs += [
            pl.BlockSpec((PAD_DIMS[layer_idx], PAD_DIMS[layer_idx + 1]), lambda i: (0, 0)),
            pl.BlockSpec((1, PAD_DIMS[layer_idx + 1]), lambda i: (0, 0)),
        ]

    macs = sum(PAD_DIMS[i] * PAD_DIMS[i + 1] for i in range(7))
    weight_bytes = sum(PAD_DIMS[i] * PAD_DIMS[i + 1] * 2 + PAD_DIMS[i + 1] * 4
                       for i in range(7))
    bytes_accessed = rows * IN_DIM * 4 + rows * OUT_PAD * 4 + weight_bytes

    out = pl.pallas_call(
        mlp_kernel,
        out_shape=jax.ShapeDtypeStruct((rows, OUT_PAD), jnp.float32),
        grid=(n_tiles,),
        in_specs=in_specs,
        out_specs=pl.BlockSpec((tb, OUT_PAD), lambda i: (i, 0)),
        scratch_shapes=[pltpu.VMEM((tb, IN_PAD), jnp.bfloat16)],
        compiler_params=pltpu.CompilerParams(
            dimension_semantics=("parallel",),       # shard batch tiles across TCs (v7x)
            vmem_limit_bytes=48 * 1024 * 1024),      # < 64 MiB physical cap on v7x
        cost_estimate=pl.CostEstimate(
            flops=2 * rows * macs,
            transcendentals=rows * OUT_PAD,
            bytes_accessed=bytes_accessed),
    )(*flat_args)

    return out[:batch, :1].reshape(batch, 1, 1).astype(jnp.float32)


# ---------------------------------------------------------------------------
# Deterministic parameter construction (PyTorch default inits), BN folded
# ---------------------------------------------------------------------------
def make_params(key):
    # Eval-mode BatchNorm1d(1) scalar affine (PyTorch init: gamma=1, beta=0, rm=0, rv=1).
    gamma, beta, r_mean, r_var = 1.0, 0.0, 0.0, 1.0
    bn_scale = gamma / float(jnp.sqrt(r_var + BN_EPS))
    bn_shift = beta - r_mean * bn_scale

    linear_kernel = []      # folded, padded, bf16 weights / f32 biases for the kernel
    linear_raw = []         # raw f32 weights for the pure-JAX reference
    for i in range(7):
        fan_in, fan_out = DIMS[i], DIMS[i + 1]
        key, kw, kb = jax.random.split(key, 3)
        bound = 1.0 / float(fan_in) ** 0.5
        w = jax.random.uniform(kw, (fan_out, fan_in), jnp.float32, -bound, bound)
        b = jax.random.uniform(kb, (fan_out,), jnp.float32, -bound, bound)
        linear_raw.append((w, b))

        # Layers 0..5 have BatchNorm after them; final layer (12->1) only has Sigmoid.
        if i < 6:
            w_f = w * bn_scale
            b_f = b * bn_scale + bn_shift
        else:
            w_f, b_f = w, b

        # Store transposed + zero-padded: (in_pad, out_pad); zero rows/cols guarantee
        # padded-lane garbage never leaks into valid outputs.
        w_pad = jnp.zeros((PAD_DIMS[i], PAD_DIMS[i + 1]), jnp.float32)
        w_pad = w_pad.at[:fan_in, :fan_out].set(w_f.T).astype(jnp.bfloat16)
        b_pad = jnp.zeros((1, PAD_DIMS[i + 1]), jnp.float32).at[0, :fan_out].set(b_f)
        linear_kernel.append((w_pad, b_pad))

    return {"linear": linear_kernel, "raw": linear_raw}


# ---------------------------------------------------------------------------
# Pure-JAX f32 reference (unfolded BN, PyTorch eval semantics)
# ---------------------------------------------------------------------------
def reference_forward(x, params, batch):
    h = x.reshape(batch, DIMS[0]).astype(jnp.float32)
    gamma, beta, r_mean, r_var = 1.0, 0.0, 0.0, 1.0
    scale = gamma / jnp.sqrt(r_var + BN_EPS)
    shift = beta - r_mean * scale
    for i, (w, b) in enumerate(params["raw"]):
        h = h @ w.T + b
        if ACTS[i] == "relu":
            h = jnp.maximum(h * scale + shift, 0.0)
        elif ACTS[i] == "relu6":
            h = jnp.clip(h * scale + shift, 0.0, 6.0)
        else:  # final layer: sigmoid, no BN
            h = jax.nn.sigmoid(h)
    return h.reshape(batch, 1, 1)


if __name__ == "__main__":
    key = jax.random.PRNGKey(0)
    k_param, k_x = jax.random.split(key)

    params = make_params(k_param)

    batch = 2
    x = jax.random.normal(k_x, (batch, 1, 403), jnp.float32)   # (N, C=1, L=403)

    out = jax.block_until_ready(cnn_network_forward(x, params["linear"], batch))
    ref = reference_forward(x, params, batch)

    assert out.shape == (batch, 1, 1), out.shape
    # bf16 MXU weights/activations -> compare against the f32 reference at a tolerance
    # comfortably covering bf16 rounding.
    assert jnp.allclose(out, ref, atol=1e-2, rtol=1e-2), (out, ref)

    print("KERNEL_OK")
</pallas_src>

<mosaic_0001>
module attributes {stable_mosaic.version = 11 : i64} {
  func.func @mlp_kernel(%arg0: i32, %arg1: memref<8x403xf32, #tpu.memory_space<vmem>>, %arg2: memref<512x384xbf16, #tpu.memory_space<vmem>>, %arg3: memref<1x384xf32, #tpu.memory_space<vmem>>, %arg4: memref<384x256xbf16, #tpu.memory_space<vmem>>, %arg5: memref<1x256xf32, #tpu.memory_space<vmem>>, %arg6: memref<256x128xbf16, #tpu.memory_space<vmem>>, %arg7: memref<1x128xf32, #tpu.memory_space<vmem>>, %arg8: memref<128x128xbf16, #tpu.memory_space<vmem>>, %arg9: memref<1x128xf32, #tpu.memory_space<vmem>>, %arg10: memref<128x128xbf16, #tpu.memory_space<vmem>>, %arg11: memref<1x128xf32, #tpu.memory_space<vmem>>, %arg12: memref<128x128xbf16, #tpu.memory_space<vmem>>, %arg13: memref<1x128xf32, #tpu.memory_space<vmem>>, %arg14: memref<128x128xbf16, #tpu.memory_space<vmem>>, %arg15: memref<1x128xf32, #tpu.memory_space<vmem>>, %arg16: memref<8x8xf32, #tpu.memory_space<vmem>>, %arg17: memref<8x512xbf16, #tpu.memory_space<vmem>>) attributes {dimension_semantics = [#tpu.dimension_semantics<parallel>], iteration_bounds = array<i64: 1>, scalar_prefetch = 0 : i64, scratch_operands = 1 : i64, tpu.core_type = #tpu.core_type<tc>, window_params = [{transform_indices = @transform_0, window_bounds = array<i64: 8, 403>}, {pipeline_mode = #tpu.pipeline_mode<synchronous>, transform_indices = @transform_1, window_bounds = array<i64: 512, 384>}, {pipeline_mode = #tpu.pipeline_mode<synchronous>, transform_indices = @transform_2, window_bounds = array<i64: 1, 384>}, {pipeline_mode = #tpu.pipeline_mode<synchronous>, transform_indices = @transform_3, window_bounds = array<i64: 384, 256>}, {pipeline_mode = #tpu.pipeline_mode<synchronous>, transform_indices = @transform_4, window_bounds = array<i64: 1, 256>}, {pipeline_mode = #tpu.pipeline_mode<synchronous>, transform_indices = @transform_5, window_bounds = array<i64: 256, 128>}, {pipeline_mode = #tpu.pipeline_mode<synchronous>, transform_indices = @transform_6, window_bounds = array<i64: 1, 128>}, {pipeline_mode = #tpu.pipeline_mode<synchronous>, transform_indices = @transform_7, window_bounds = array<i64: 128, 128>}, {pipeline_mode = #tpu.pipeline_mode<synchronous>, transform_indices = @transform_8, window_bounds = array<i64: 1, 128>}, {pipeline_mode = #tpu.pipeline_mode<synchronous>, transform_indices = @transform_9, window_bounds = array<i64: 128, 128>}, {pipeline_mode = #tpu.pipeline_mode<synchronous>, transform_indices = @transform_10, window_bounds = array<i64: 1, 128>}, {pipeline_mode = #tpu.pipeline_mode<synchronous>, transform_indices = @transform_11, window_bounds = array<i64: 128, 128>}, {pipeline_mode = #tpu.pipeline_mode<synchronous>, transform_indices = @transform_12, window_bounds = array<i64: 1, 128>}, {pipeline_mode = #tpu.pipeline_mode<synchronous>, transform_indices = @transform_13, window_bounds = array<i64: 128, 128>}, {pipeline_mode = #tpu.pipeline_mode<synchronous>, transform_indices = @transform_14, window_bounds = array<i64: 1, 128>}, {transform_indices = @transform_15, window_bounds = array<i64: 8, 8>}]} {
    %c0 = arith.constant 0 : index
    %c0_0 = arith.constant 0 : index
    %0 = vector.load %arg1[%c0, %c0_0] : memref<8x403xf32, #tpu.memory_space<vmem>>, vector<8x403xf32>
    %1 = arith.truncf %0 : vector<8x403xf32> to vector<8x403xbf16>
    %c0_1 = arith.constant 0 : index
    %c0_2 = arith.constant 0 : index
    %2 = vector.load %arg17[%c0_1, %c0_2] : memref<8x512xbf16, #tpu.memory_space<vmem>>, vector<8x403xbf16>
    tpu.vector_store %arg17[%c0_1, %c0_2], %1 {strides = array<i32>} : memref<8x512xbf16, #tpu.memory_space<vmem>>, vector<8x403xbf16>,
    %cst = arith.constant 0.000000e+00 : bf16
    %3 = vector.broadcast %cst : bf16 to vector<8x109xbf16>
    %c0_3 = arith.constant 0 : index
    %c403 = arith.constant 403 : index
    %4 = vector.load %arg17[%c0_3, %c403] : memref<8x512xbf16, #tpu.memory_space<vmem>>, vector<8x109xbf16>
    tpu.vector_store %arg17[%c0_3, %c403], %3 {strides = array<i32>} : memref<8x512xbf16, #tpu.memory_space<vmem>>, vector<8x109xbf16>,
    %c0_4 = arith.constant 0 : index
    %c0_5 = arith.constant 0 : index
    %5 = vector.load %arg17[%c0_4, %c0_5] : memref<8x512xbf16, #tpu.memory_space<vmem>>, vector<8x512xbf16>
    %c0_6 = arith.constant 0 : index
    %c0_7 = arith.constant 0 : index
    %6 = vector.load %arg2[%c0_6, %c0_7] : memref<512x384xbf16, #tpu.memory_space<vmem>>, vector<512x384xbf16>
    %cst_8 = arith.constant dense<0.000000e+00> : vector<8x384xf32>
    %7 = tpu.matmul %5, %6, %cst_8 {dimension_numbers = #tpu.dot_dimension_numbers<[1], [0], [0], [1], [0, 0, 1, 1], [], []>} : vector<8x512xbf16>, vector<512x384xbf16>, vector<8x384xf32> -> vector<8x384xf32>
    %c0_9 = arith.constant 0 : index
    %c0_10 = arith.constant 0 : index
    %8 = vector.load %arg3[%c0_9, %c0_10] : memref<1x384xf32, #tpu.memory_space<vmem>>, vector<1x384xf32>
    %9 = vector.broadcast %8 : vector<1x384xf32> to vector<8x384xf32>
    %10 = arith.addf %7, %9 : vector<8x384xf32>
    %cst_11 = arith.constant 0.000000e+00 : f32
    %11 = vector.broadcast %cst_11 : f32 to vector<8x384xf32>
    %12 = arith.maximumf %10, %11 : vector<8x384xf32>
    %13 = arith.truncf %12 : vector<8x384xf32> to vector<8x384xbf16>
    %c0_12 = arith.constant 0 : index
    %c0_13 = arith.constant 0 : index
    %14 = vector.load %arg4[%c0_12, %c0_13] : memref<384x256xbf16, #tpu.memory_space<vmem>>, vector<384x256xbf16>
    %cst_14 = arith.constant dense<0.000000e+00> : vector<8x256xf32>
    %15 = tpu.matmul %13, %14, %cst_14 {dimension_numbers = #tpu.dot_dimension_numbers<[1], [0], [0], [1], [0, 0, 1, 1], [], []>} : vector<8x384xbf16>, vector<384x256xbf16>, vector<8x256xf32> -> vector<8x256xf32>
    %c0_15 = arith.constant 0 : index
    %c0_16 = arith.constant 0 : index
    %16 = vector.load %arg5[%c0_15, %c0_16] : memref<1x256xf32, #tpu.memory_space<vmem>>, vector<1x256xf32>
    %17 = vector.broadcast %16 : vector<1x256xf32> to vector<8x256xf32>
    %18 = arith.addf %15, %17 : vector<8x256xf32>
    %cst_17 = arith.constant 0.000000e+00 : f32
    %19 = vector.broadcast %cst_17 : f32 to vector<8x256xf32>
    %20 = arith.maximumf %18, %19 : vector<8x256xf32>
    %21 = arith.truncf %20 : vector<8x256xf32> to vector<8x256xbf16>
    %c0_18 = arith.constant 0 : index
    %c0_19 = arith.constant 0 : index
    %22 = vector.load %arg6[%c0_18, %c0_19] : memref<256x128xbf16, #tpu.memory_space<vmem>>, vector<256x128xbf16>
    %cst_20 = arith.constant dense<0.000000e+00> : vector<8x128xf32>
    %23 = tpu.matmul %21, %22, %cst_20 {dimension_numbers = #tpu.dot_dimension_numbers<[1], [0], [0], [1], [0, 0, 1, 1], [], []>} : vector<8x256xbf16>, vector<256x128xbf16>, vector<8x128xf32> -> vector<8x128xf32>
    %c0_21 = arith.constant 0 : index
    %c0_22 = arith.constant 0 : index
    %24 = vector.load %arg7[%c0_21, %c0_22] : memref<1x128xf32, #tpu.memory_space<vmem>>, vector<1x128xf32>
    %25 = vector.broadcast %24 : vector<1x128xf32> to vector<8x128xf32>
    %26 = arith.addf %23, %25 : vector<8x128xf32>
    %cst_23 = arith.constant 0.000000e+00 : f32
    %27 = vector.broadcast %cst_23 : f32 to vector<8x128xf32>
    %28 = arith.maximumf %26, %27 : vector<8x128xf32>
    %29 = arith.truncf %28 : vector<8x128xf32> to vector<8x128xbf16>
    %c0_24 = arith.constant 0 : index
    %c0_25 = arith.constant 0 : index
    %30 = vector.load %arg8[%c0_24, %c0_25] : memref<128x128xbf16, #tpu.memory_space<vmem>>, vector<128x128xbf16>
    %cst_26 = arith.constant dense<0.000000e+00> : vector<8x128xf32>
    %31 = tpu.matmul %29, %30, %cst_26 {dimension_numbers = #tpu.dot_dimension_numbers<[1], [0], [0], [1], [0, 0, 1, 1], [], []>} : vector<8x128xbf16>, vector<128x128xbf16>, vector<8x128xf32> -> vector<8x128xf32>
    %c0_27 = arith.constant 0 : index
    %c0_28 = arith.constant 0 : index
    %32 = vector.load %arg9[%c0_27, %c0_28] : memref<1x128xf32, #tpu.memory_space<vmem>>, vector<1x128xf32>
    %33 = vector.broadcast %32 : vector<1x128xf32> to vector<8x128xf32>
    %34 = arith.addf %31, %33 : vector<8x128xf32>
    %cst_29 = arith.constant 0.000000e+00 : f32
    %cst_30 = arith.constant 6.000000e+00 : f32
    %35 = vector.broadcast %cst_29 : f32 to vector<8x128xf32>
    %36 = arith.maximumf %35, %34 : vector<8x128xf32>
    %37 = vector.broadcast %cst_30 : f32 to vector<8x128xf32>
    %38 = arith.minimumf %37, %36 : vector<8x128xf32>
    %39 = arith.truncf %38 : vector<8x128xf32> to vector<8x128xbf16>
    %c0_31 = arith.constant 0 : index
    %c0_32 = arith.constant 0 : index
    %40 = vector.load %arg10[%c0_31, %c0_32] : memref<128x128xbf16, #tpu.memory_space<vmem>>, vector<128x128xbf16>
    %cst_33 = arith.constant dense<0.000000e+00> : vector<8x128xf32>
    %41 = tpu.matmul %39, %40, %cst_33 {dimension_numbers = #tpu.dot_dimension_numbers<[1], [0], [0], [1], [0, 0, 1, 1], [], []>} : vector<8x128xbf16>, vector<128x128xbf16>, vector<8x128xf32> -> vector<8x128xf32>
    %c0_34 = arith.constant 0 : index
    %c0_35 = arith.constant 0 : index
    %42 = vector.load %arg11[%c0_34, %c0_35] : memref<1x128xf32, #tpu.memory_space<vmem>>, vector<1x128xf32>
    %43 = vector.broadcast %42 : vector<1x128xf32> to vector<8x128xf32>
    %44 = arith.addf %41, %43 : vector<8x128xf32>
    %cst_36 = arith.constant 0.000000e+00 : f32
    %cst_37 = arith.constant 6.000000e+00 : f32
    %45 = vector.broadcast %cst_36 : f32 to vector<8x128xf32>
    %46 = arith.maximumf %45, %44 : vector<8x128xf32>
    %47 = vector.broadcast %cst_37 : f32 to vector<8x128xf32>
    %48 = arith.minimumf %47, %46 : vector<8x128xf32>
    %49 = arith.truncf %48 : vector<8x128xf32> to vector<8x128xbf16>
    %c0_38 = arith.constant 0 : index
    %c0_39 = arith.constant 0 : index
    %50 = vector.load %arg12[%c0_38, %c0_39] : memref<128x128xbf16, #tpu.memory_space<vmem>>, vector<128x128xbf16>
    %cst_40 = arith.constant dense<0.000000e+00> : vector<8x128xf32>
    %51 = tpu.matmul %49, %50, %cst_40 {dimension_numbers = #tpu.dot_dimension_numbers<[1], [0], [0], [1], [0, 0, 1, 1], [], []>} : vector<8x128xbf16>, vector<128x128xbf16>, vector<8x128xf32> -> vector<8x128xf32>
    %c0_41 = arith.constant 0 : index
    %c0_42 = arith.constant 0 : index
    %52 = vector.load %arg13[%c0_41, %c0_42] : memref<1x128xf32, #tpu.memory_space<vmem>>, vector<1x128xf32>
    %53 = vector.broadcast %52 : vector<1x128xf32> to vector<8x128xf32>
    %54 = arith.addf %51, %53 : vector<8x128xf32>
    %cst_43 = arith.constant 0.000000e+00 : f32
    %cst_44 = arith.constant 6.000000e+00 : f32
    %55 = vector.broadcast %cst_43 : f32 to vector<8x128xf32>
    %56 = arith.maximumf %55, %54 : vector<8x128xf32>
    %57 = vector.broadcast %cst_44 : f32 to vector<8x128xf32>
    %58 = arith.minimumf %57, %56 : vector<8x128xf32>
    %59 = arith.truncf %58 : vector<8x128xf32> to vector<8x128xbf16>
    %c0_45 = arith.constant 0 : index
    %c0_46 = arith.constant 0 : index
    %60 = vector.load %arg14[%c0_45, %c0_46] : memref<128x128xbf16, #tpu.memory_space<vmem>>, vector<128x128xbf16>
    %cst_47 = arith.constant dense<0.000000e+00> : vector<8x128xf32>
    %61 = tpu.matmul %59, %60, %cst_47 {dimension_numbers = #tpu.dot_dimension_numbers<[1], [0], [0], [1], [0, 0, 1, 1], [], []>} : vector<8x128xbf16>, vector<128x128xbf16>, vector<8x128xf32> -> vector<8x128xf32>
    %c0_48 = arith.constant 0 : index
    %c0_49 = arith.constant 0 : index
    %62 = vector.load %arg15[%c0_48, %c0_49] : memref<1x128xf32, #tpu.memory_space<vmem>>, vector<1x128xf32>
    %63 = vector.broadcast %62 : vector<1x128xf32> to vector<8x128xf32>
    %64 = arith.addf %61, %63 : vector<8x128xf32>
    %65 = vector.extract_strided_slice %64 {offsets = [0, 0], sizes = [8, 8], strides = [1, 1]} : vector<8x128xf32> to vector<8x8xf32>
    %cst_50 = arith.constant 0.000000e+00 : f32
    %66 = vector.broadcast %cst_50 : f32 to vector<8x8xf32>
    %67 = arith.subf %66, %65 : vector<8x8xf32>
    %68 = math.exp %67 : vector<8x8xf32>
    %cst_51 = arith.constant 1.000000e+00 : f32
    %69 = vector.broadcast %cst_51 : f32 to vector<8x8xf32>
    %70 = arith.addf %69, %68 : vector<8x8xf32>
    %cst_52 = arith.constant 1.000000e+00 : f32
    %71 = vector.broadcast %cst_52 : f32 to vector<8x8xf32>
    %72 = arith.divf %71, %70 : vector<8x8xf32>
    %c0_53 = arith.constant 0 : index
    %c0_54 = arith.constant 0 : index
    %73 = vector.load %arg16[%c0_53, %c0_54] : memref<8x8xf32, #tpu.memory_space<vmem>>, vector<8x8xf32>
    tpu.vector_store %arg16[%c0_53, %c0_54], %72 {strides = array<i32>} : memref<8x8xf32, #tpu.memory_space<vmem>>, vector<8x8xf32>,
    return
  }
  func.func @transform_0(%arg0: i32) -> (i32, i32) {
    %c0_i32 = arith.constant 0 : i32
    %c0_i32_0 = arith.constant 0 : i32
    return %arg0, %c0_i32 : i32, i32
  }
  func.func @transform_1(%arg0: i32) -> (i32, i32) {
    %c0_i32 = arith.constant 0 : i32
    %c0_i32_0 = arith.constant 0 : i32
    %c0_i32_1 = arith.constant 0 : i32
    return %c0_i32, %c0_i32_0 : i32, i32
  }
  func.func @transform_2(%arg0: i32) -> (i32, i32) {
    %c0_i32 = arith.constant 0 : i32
    %c0_i32_0 = arith.constant 0 : i32
    %c0_i32_1 = arith.constant 0 : i32
    return %c0_i32, %c0_i32_0 : i32, i32
  }
  func.func @transform_3(%arg0: i32) -> (i32, i32) {
    %c0_i32 = arith.constant 0 : i32
    %c0_i32_0 = arith.constant 0 : i32
    %c0_i32_1 = arith.constant 0 : i32
    return %c0_i32, %c0_i32_0 : i32, i32
  }
  func.func @transform_4(%arg0: i32) -> (i32, i32) {
    %c0_i32 = arith.constant 0 : i32
    %c0_i32_0 = arith.constant 0 : i32
    %c0_i32_1 = arith.constant 0 : i32
    return %c0_i32, %c0_i32_0 : i32, i32
  }
  func.func @transform_5(%arg0: i32) -> (i32, i32) {
    %c0_i32 = arith.constant 0 : i32
    %c0_i32_0 = arith.constant 0 : i32
    %c0_i32_1 = arith.constant 0 : i32
    return %c0_i32, %c0_i32_0 : i32, i32
  }
  func.func @transform_6(%arg0: i32) -> (i32, i32) {
    %c0_i32 = arith.constant 0 : i32
    %c0_i32_0 = arith.constant 0 : i32
    %c0_i32_1 = arith.constant 0 : i32
    return %c0_i32, %c0_i32_0 : i32, i32
  }
  func.func @transform_7(%arg0: i32) -> (i32, i32) {
    %c0_i32 = arith.constant 0 : i32
    %c0_i32_0 = arith.constant 0 : i32
    %c0_i32_1 = arith.constant 0 : i32
    return %c0_i32, %c0_i32_0 : i32, i32
  }
  func.func @transform_8(%arg0: i32) -> (i32, i32) {
    %c0_i32 = arith.constant 0 : i32
    %c0_i32_0 = arith.constant 0 : i32
    %c0_i32_1 = arith.constant 0 : i32
    return %c0_i32, %c0_i32_0 : i32, i32
  }
  func.func @transform_9(%arg0: i32) -> (i32, i32) {
    %c0_i32 = arith.constant 0 : i32
    %c0_i32_0 = arith.constant 0 : i32
    %c0_i32_1 = arith.constant 0 : i32
    return %c0_i32, %c0_i32_0 : i32, i32
  }
  func.func @transform_10(%arg0: i32) -> (i32, i32) {
    %c0_i32 = arith.constant 0 : i32
    %c0_i32_0 = arith.constant 0 : i32
    %c0_i32_1 = arith.constant 0 : i32
    return %c0_i32, %c0_i32_0 : i32, i32
  }
  func.func @transform_11(%arg0: i32) -> (i32, i32) {
    %c0_i32 = arith.constant 0 : i32
    %c0_i32_0 = arith.constant 0 : i32
    %c0_i32_1 = arith.constant 0 : i32
    return %c0_i32, %c0_i32_0 : i32, i32
  }
  func.func @transform_12(%arg0: i32) -> (i32, i32) {
    %c0_i32 = arith.constant 0 : i32
    %c0_i32_0 = arith.constant 0 : i32
    %c0_i32_1 = arith.constant 0 : i32
    return %c0_i32, %c0_i32_0 : i32, i32
  }
  func.func @transform_13(%arg0: i32) -> (i32, i32) {
    %c0_i32 = arith.constant 0 : i32
    %c0_i32_0 = arith.constant 0 : i32
    %c0_i32_1 = arith.constant 0 : i32
    return %c0_i32, %c0_i32_0 : i32, i32
  }
  func.func @transform_14(%arg0: i32) -> (i32, i32) {
    %c0_i32 = arith.constant 0 : i32
    %c0_i32_0 = arith.constant 0 : i32
    %c0_i32_1 = arith.constant 0 : i32
    return %c0_i32, %c0_i32_0 : i32, i32
  }
  func.func @transform_15(%arg0: i32) -> (i32, i32) {
    %c0_i32 = arith.constant 0 : i32
    %c0_i32_0 = arith.constant 0 : i32
    return %arg0, %c0_i32 : i32, i32
  }
}

</mosaic_0001>

<bundles_post_ra>
// kernel: cnn_network_forward.1
= control target key start
LH: loop header
LB: loop body
LE: loop exit
PB: predicated region body
PF: predicated region fallthrough
CT: control target
= control target key end

     0   :  { %20 = vsyncpa [#allocation4], 0  ;;  %s3106_s0 = inlined_call_operand.vmem [shape: f32[8,403], index: 0, kind: input, shape index: {}]   ;;  %s3107_s1 = inlined_call_operand.hbm [shape: bf16[512,384], index: 1, kind: input, shape index: {}]   ;;  %s3108_s2 = inlined_call_operand.vmem [shape: f32[1,384], index: 2, kind: input, shape index: {}]   ;;  %s3109_s3 = inlined_call_operand.hbm [shape: bf16[384,256], index: 3, kind: input, shape index: {}]   ;;  %s3110_s4 = inlined_call_operand.vmem [shape: f32[1,256], index: 4, kind: input, shape index: {}]   ;;  %s3111_s5 = inlined_call_operand.hbm [shape: bf16[256,128], index: 5, kind: input, shape index: {}]   ;;  %s3112_s6 = inlined_call_operand.hbm [shape: f32[1,128], index: 6, kind: input, shape index: {}]   ;;  %s3113_s7 = inlined_call_operand.vmem [shape: bf16[128,128], index: 7, kind: input, shape index: {}]   ;;  %s3114_s8 = inlined_call_operand.vmem [shape: f32[1,128], index: 8, kind: input, shape index: {}]   ;;  %s3115_s9 = inlined_call_operand.hbm [shape: bf16[128,128], index: 9, kind: input, shape index: {}]   ;;  %s3116_s10 = inlined_call_operand.vmem [shape: f32[1,128], index: 10, kind: input, shape index: {}]   ;;  %s3117_s11 = inlined_call_operand.hbm [shape: bf16[128,128], index: 11, kind: input, shape index: {}]   ;;  %s3118_s12 = inlined_call_operand.vmem [shape: f32[1,128], index: 12, kind: input, shape index: {}]   ;;  %s3119_s13 = inlined_call_operand.hbm [shape: bf16[128,128], index: 13, kind: input, shape index: {}]   ;;  %s3120_s14 = inlined_call_operand.vmem [shape: f32[1,128], index: 14, kind: input, shape index: {}]   ;;  %s3121_s15 = inlined_call_operand.vmem [shape: f32[8,8], index: 15, kind: output, shape index: {}]  }
   0x1   :  { %21 = vsyncpa [#allocation6], 0 }
   0x2   :  { %22 = vsyncpa [#allocation9], 0 }
   0x3   :  { %23 = vsyncpa [#allocation12], 0  ;;  %s2851_s18 = smov [#allocation5]  }
   0x4   :  { %s45_s19 = sshll.u32 %s2851_s18, 4  ;;  %s46_s19 = int_to_ptr.vmem [resolvable:$true] %s45_s19 }
   0x5   :  { %s2711_s20 = scalar_lea.vmem %s46_s19, 6144  ;;  %p2716_p1 = scmp.lt.s32.totalorder %s46_s19, %s46_s19 }
   0x6   :  { %p2712_p0 = scmp.ne.s32.totalorder %s46_s19, %s2711_s20  ;;  %p2717_p2 = scmp.lt.s32.totalorder %s2711_s20, %s2711_s20 }
   0x8   :  { %p2718_p3 = por %p2717_p2, %p2716_p1 }
   0xa   :  { %p2719_p4 = pnand %p2718_p3, %p2712_p0 }
   0xc   :  { %2722 = shalt.err (!%p2719_p4)
}
   0xd   :  { %s2852_s21 = smov 128   ;;  %s2853_s22 = smov 8  }
   0xe   :  { %51 = dma.hbm_to_vmem [thread:$0]  %s3109_s3, 6144, %s46_s19, [#allocation6], %s2852_s21, %s2852_s21, %s2853_s22  }
   0xf   :  { %s2854_s25 = smov [#allocation8]  }
  0x10   :  { %s72_s26 = sshll.u32 %s2854_s25, 4  ;;  %s73_s26 = int_to_ptr.vmem [resolvable:$true] %s72_s26 }
  0x11   :  { %s2731_s27 = scalar_lea.vmem %s73_s26, 16  ;;  %s2735_s28 = scalar_lea.vmem %s73_s26, 32 }
  0x12   :  { %p2732_p5 = scmp.ne.s32.totalorder %s73_s26, %s2731_s27  ;;  %p2736_p6 = scmp.lt.s32.totalorder %s73_s26, %s73_s26 }
  0x13   :  { %p2737_p7 = scmp.lt.s32.totalorder %s2735_s28, %s2731_s27 }
  0x15   :  { %p2738_p8 = por %p2737_p7, %p2736_p6 }
  0x17   :  { %p2739_p9 = pnand %p2738_p8, %p2732_p5 }
  0x19   :  { %2742 = shalt.err (!%p2739_p9)
}
  0x1a   :  { %75 = dma.hbm_to_vmem [thread:$0]  %s3112_s6, 16, %s73_s26, [#allocation9]  }
  0x1b   :  { %s2855_s16 = smov [#allocation11]   ;;  %s2856_s18 = smov [#allocation3]  }
  0x1c   :  { %s99_s17 = sshll.u32 %s2855_s16, 4  ;;  %s31_s20 = sshll.u32 %s2856_s18, 4  ;;  %s100_s17 = int_to_ptr.vmem [resolvable:$true] %s99_s17  ;;  %s32_s20 = int_to_ptr.vmem [resolvable:$true] %s31_s20 }
  0x1d   :  { %s2751_s3 = scalar_lea.vmem %s100_s17, 1024  ;;  %p2756_p11 = scmp.lt.s32.totalorder %s100_s17, %s100_s17 }
  0x1e   :  { %p2752_p10 = scmp.ne.s32.totalorder %s100_s17, %s2751_s3  ;;  %p2757_p12 = scmp.lt.s32.totalorder %s2751_s3, %s2751_s3 }
  0x20   :  { %p2758_p13 = por %p2757_p12, %p2756_p11 }
  0x22   :  { %p2759_p0 = pnand %p2758_p13, %p2752_p10 }
  0x24   :  { %2762 = shalt.err (!%p2759_p0)
}
  0x25   :  { %s2857_s19 = smov 64   ;;  %s2858_s21 = smov 4  }
  0x26   :  { %105 = dma.hbm_to_vmem [thread:$0]  %s3117_s11, 1024, %s100_s17, [#allocation12], %s2857_s19, %s2857_s19, %s2858_s21  }
  0x27   :  { %s2771_s23 = scalar_lea.vmem %s32_s20, 12288  ;;  %p2776_p2 = scmp.lt.s32.totalorder %s32_s20, %s32_s20 }
  0x28   :  { %p2772_p1 = scmp.ne.s32.totalorder %s32_s20, %s2771_s23  ;;  %p2777_p3 = scmp.lt.s32.totalorder %s2771_s23, %s2771_s23 }
  0x2a   :  { %p2778_p4 = por %p2777_p3, %p2776_p2 }
  0x2c   :  { %p2779_p5 = pnand %p2778_p4, %p2772_p1 }
  0x2e   :  { %2782 = shalt.err (!%p2779_p5)
}
  0x2f   :  { %s2859_s24 = smov 192   ;;  %s2860_s25 = smov 12  }
  0x30   :  { %37 = dma.hbm_to_vmem [thread:$0]  %s3107_s1, 12288, %s32_s20, [#allocation4], %s2859_s24, %s2859_s24, %s2860_s25  }
  0x31   :  { %s2861_s28 = smov [#allocation7]   ;;  %s2862_s30 = smov [#allocation10]  }
  0x32   :  { %s59_s29 = sshll.u32 %s2861_s28, 4  ;;  %s85_s16 = sshll.u32 %s2862_s30, 4  ;;  %s60_s29 = int_to_ptr.vmem [resolvable:$true] %s59_s29  ;;  %s86_s16 = int_to_ptr.vmem [resolvable:$true] %s85_s16 }
  0x33   :  { %s2791_s11 = scalar_lea.vmem %s60_s29, 2048  ;;  %p2796_p7 = scmp.lt.s32.totalorder %s60_s29, %s60_s29 }
  0x34   :  { %p2792_p6 = scmp.ne.s32.totalorder %s60_s29, %s2791_s11  ;;  %p2797_p8 = scmp.lt.s32.totalorder %s2791_s11, %s2791_s11 }
  0x36   :  { %p2798_p9 = por %p2797_p8, %p2796_p7 }
  0x38   :  { %p2799_p10 = pnand %p2798_p9, %p2792_p6 }
  0x3a   :  { %2802 = shalt.err (!%p2799_p10)
}
  0x3b   :  { %65 = dma.hbm_to_vmem [thread:$0]  %s3111_s5, 2048, %s60_s29, [#allocation6], %s2857_s19, %s2857_s19, %s2858_s21  }
  0x3c   :  { %s2811_s1 = scalar_lea.vmem %s86_s16, 1024  ;;  %p2816_p12 = scmp.lt.s32.totalorder %s86_s16, %s86_s16 }
  0x3d   :  { %p2812_p11 = scmp.ne.s32.totalorder %s86_s16, %s2811_s1  ;;  %p2817_p13 = scmp.lt.s32.totalorder %s2811_s1, %s2811_s1 }
  0x3f   :  { %p2818_p0 = por %p2817_p13, %p2816_p12 }
  0x41   :  { %p2819_p1 = pnand %p2818_p0, %p2812_p11 }
  0x43   :  { %2822 = shalt.err (!%p2819_p1)
}
  0x44   :  { %91 = dma.hbm_to_vmem [thread:$0]  %s3115_s9, 1024, %s86_s16, [#allocation9], %s2857_s19, %s2857_s19, %s2858_s21  }
  0x45   :  { %s2863_s22 = smov [#allocation13]  }
  0x46   :  { %s113_s6 = sshll.u32 %s2863_s22, 4  ;;  %s114_s6 = int_to_ptr.vmem [resolvable:$true] %s113_s6 }
  0x47   :  { %s2831_s23 = scalar_lea.vmem %s114_s6, 1024  ;;  %p2836_p3 = scmp.lt.s32.totalorder %s114_s6, %s114_s6 }
  0x48   :  { %p2832_p2 = scmp.ne.s32.totalorder %s114_s6, %s2831_s23  ;;  %p2837_p4 = scmp.lt.s32.totalorder %s2831_s23, %s2831_s23 }
  0x4a   :  { %p2838_p5 = por %p2837_p4, %p2836_p3 }
  0x4c   :  { %p2839_p6 = pnand %p2838_p5, %p2832_p2 }
  0x4e   :  { %2842 = shalt.err (!%p2839_p6)
}
  0x4f   :  { %119 = dma.hbm_to_vmem [thread:$0]  %s3119_s13, 1024, %s114_s6, [#allocation12], %s2857_s19, %s2857_s19, %s2858_s21  }
  0x50   :  { %2843 = dma.done.wait [#allocation4], 12288  }
  0x51   :  { %2844 = vsyncadd [#allocation4], 4294955008 }
  0x52   :  { %2845 = dma.done.wait [#allocation6], 8192  }
  0x53   :  { %2846 = vsyncadd [#allocation6], 4294959104 }
  0x54   :  { %2847 = dma.done.wait [#allocation9], 1040  }
  0x55   :  { %2848 = vsyncadd [#allocation9], 4294966256 }
  0x56   :  { %2849 = dma.done.wait [#allocation12], 2048  }
  0x57   :  { %2850 = vsyncadd [#allocation12], 4294965248  ;;  %v2447_v0 = vld [vmem:[#allocation3 + $0xac] ss:$12 sps:$4 sm:$0xff]   ;;  %v2451_v2 = vld [vmem:[#allocation3 + $0xa8] ss:$12 sps:$4 sm:$0xff]  }
  0x58   :  { %v2449_v1 = vld [vmem:[#allocation3 + $0x22c] ss:$12 sps:$4 sm:$0xff]   ;;  %844 = vmatprep.subr.bf16.mxu0 %v2447_v0  ;;  %v2452_v3 = vld [vmem:[#allocation3 + $0x228] ss:$12 sps:$4 sm:$0xff]   ;;  %v2457_v6 = vld [vmem:[#allocation3 + $0x90] ss:$12 sps:$4 sm:$0xff]  }
  0x59   :  { %885 = vmatprep.subr.bf16.mxu1 %v2449_v1  ;;  %v2453_v4 = vld [vmem:[#allocation3 + $0x94] ss:$12 sps:$4 sm:$0xff]   ;;  %845 = vmatpush1.bf16.msra.mxu0 %v2451_v2  ;;  %v2458_v7 = vld [vmem:[#allocation3 + $0x210] ss:$12 sps:$4 sm:$0xff]   ;;  %v2463_v10 = vld [vmem:[#allocation3 + $0x78] ss:$12 sps:$4 sm:$0xff]  }
  0x5a   :  { %886 = vmatpush1.bf16.msra.mxu1 %v2452_v3  ;;  %v2455_v5 = vld [vmem:[#allocation3 + $0x214] ss:$12 sps:$4 sm:$0xff]   ;;  %846 = vmatprep.subr.bf16.mxu0 %v2453_v4  ;;  %v2459_v8 = vld [vmem:[#allocation3 + $0x7c] ss:$12 sps:$4 sm:$0xff]   ;;  %v2464_v11 = vld [vmem:[#allocation3 + $0x1f8] ss:$12 sps:$4 sm:$0xff]  }
  0x5b   :  { %887 = vmatprep.subr.bf16.mxu1 %v2455_v5  ;;  %v2461_v9 = vld [vmem:[#allocation3 + $0x1fc] ss:$12 sps:$4 sm:$0xff]   ;;  %v2465_v12 = vld [vmem:[#allocation3 + $0x64] ss:$12 sps:$4 sm:$0xff]   ;;  %v2469_v14 = vld [vmem:[#allocation3 + $0x60] ss:$12 sps:$4 sm:$0xff]  }
  0x5c   :  { %v2467_v13 = vld [vmem:[#allocation3 + $0x1e4] ss:$12 sps:$4 sm:$0xff]   ;;  %v2470_v15 = vld [vmem:[#allocation3 + $0x1e0] ss:$12 sps:$4 sm:$0xff]   ;;  %v2475_v18 = vld [vmem:[#allocation3 + $0x48] ss:$12 sps:$4 sm:$0xff]  }
  0x5d   :  { %847 = vmatpush1.bf16.msra.mxu0 %v2457_v6  ;;  %v2471_v16 = vld [vmem:[#allocation3 + $0x4c] ss:$12 sps:$4 sm:$0xff]   ;;  %v2476_v19 = vld [vmem:[#allocation3 + $0x1c8] ss:$12 sps:$4 sm:$0xff]   ;;  %v2481_v22 = vld [vmem:[#allocation3 + $0x30] ss:$12 sps:$4 sm:$0xff]  }
  0x5e   :  { %888 = vmatpush1.bf16.msra.mxu1 %v2458_v7  ;;  %848 = vmatprep.subr.bf16.mxu0 %v2459_v8  ;;  %v2473_v17 = vld [vmem:[#allocation3 + $0x1cc] ss:$12 sps:$4 sm:$0xff]   ;;  %v2477_v20 = vld [vmem:[#allocation3 + $0x34] ss:$12 sps:$4 sm:$0xff]   ;;  %v2482_v23 = vld [vmem:[#allocation3 + $0x1b0] ss:$12 sps:$4 sm:$0xff]  }
  0x5f   :  { %889 = vmatprep.subr.bf16.mxu1 %v2461_v9  ;;  %v2479_v21 = vld [vmem:[#allocation3 + $0x1b4] ss:$12 sps:$4 sm:$0xff]   ;;  %v2483_v24 = vld [vmem:[#allocation3 + $0x1c] ss:$12 sps:$4 sm:$0xff]   ;;  %v2487_v26 = vld [vmem:[#allocation3 + $0x18] ss:$12 sps:$4 sm:$0xff]  }
  0x60   :  { %v2485_v25 = vld [vmem:[#allocation3 + $0x19c] ss:$12 sps:$4 sm:$0xff]   ;;  %v2488_v27 = vld [vmem:[#allocation3 + $0x198] ss:$12 sps:$4 sm:$0xff]   ;;  %v2493_v30 = vld [vmem:[#allocation3] ss:$12 sps:$4 sm:$0xff]  }
  0x61   :  { %849 = vmatpush1.bf16.msra.mxu0 %v2463_v10  ;;  %v2489_v28 = vld [vmem:[#allocation3 + $0x4] ss:$12 sps:$4 sm:$0xff]   ;;  %v2494_v31 = vld [vmem:[#allocation3 + $0x180] ss:$12 sps:$4 sm:$0xff]   ;;  %v2499_v34 = vld [vmem:[#allocation3 + $0x168] ss:$12 sps:$4 sm:$0xff]  }
  0x62   :  { %890 = vmatpush1.bf16.msra.mxu1 %v2464_v11  ;;  %850 = vmatprep.subr.bf16.mxu0 %v2465_v12  ;;  %v2491_v29 = vld [vmem:[#allocation3 + $0x184] ss:$12 sps:$4 sm:$0xff]   ;;  %v2495_v32 = vld [vmem:[#allocation3 + $0x16c] ss:$12 sps:$4 sm:$0xff]   ;;  %v2500_v35 = vld [vmem:[#allocation3 + $0x2e8] ss:$12 sps:$4 sm:$0xff]  }
  0x63   :  { %891 = vmatprep.subr.bf16.mxu1 %v2467_v13  ;;  %v2497_v33 = vld [vmem:[#allocation3 + $0x2ec] ss:$12 sps:$4 sm:$0xff]   ;;  %v2501_v36 = vld [vmem:[#allocation3 + $0x154] ss:$12 sps:$4 sm:$0xff]   ;;  %v2505_v38 = vld [vmem:[#allocation3 + $0x150] ss:$12 sps:$4 sm:$0xff]  }
  0x64   :  { %v2503_v37 = vld [vmem:[#allocation3 + $0x2d4] ss:$12 sps:$4 sm:$0xff]   ;;  %vm165_vm0 = vcmask 1043456   ;;  %v2506_v39 = vld [vmem:[#allocation3 + $0x2d0] ss:$12 sps:$4 sm:$0xff]   ;;  %vm166_vm1 = vcmask 154628  }
  0x65   :  { %851 = vmatpush1.bf16.msra.mxu0 %v2469_v14  ;;  %v2507_v40 = vld [vmem:[#allocation3 + $0x13c] ss:$12 sps:$4 sm:$0xff]   ;;  %v2511_v42 = vld [vmem:[#allocation3 + $0x138] ss:$12 sps:$4 sm:$0xff]   ;;  %vm2980_vm2 = vmor %vm166_vm1, %vm165_vm0  ;;  %vm169_vm3 = vcmask 1043608   ;;  %v2864_v59 = vmov 0  }
  0x66   :  { %892 = vmatpush1.bf16.msra.mxu1 %v2470_v15  ;;  %852 = vmatprep.subr.bf16.mxu0 %v2471_v16  ;;  %v2509_v41 = vld [vmem:[#allocation3 + $0x2bc] ss:$12 sps:$4 sm:$0xff]   ;;  %v2512_v43 = vld [vmem:[#allocation3 + $0x2b8] ss:$12 sps:$4 sm:$0xff]   ;;  %v2517_v47 = vld [vmem:[#allocation3 + $0x120] ss:$12 sps:$4 sm:$0xff]  }
  0x67   :  { %893 = vmatprep.subr.bf16.mxu1 %v2473_v17  ;;  %v2513_v45 = vld [vmem:[#allocation3 + $0x124] ss:$12 sps:$4 sm:$0xff]   ;;  %v2518_v48 = vld [vmem:[#allocation3 + $0x2a0] ss:$12 sps:$4 sm:$0xff]   ;;  %v145_v50 = vld [vmem:[%s3106_s0 + $0x8] sm:$0xff]  ;;  %vm2866_vm4 = vmmov 0  }
  0x68   :  { %v2515_v46 = vld [vmem:[#allocation3 + $0x2a4] ss:$12 sps:$4 sm:$0xff]   ;;  %v147_v52 = vld [vmem:[%s3106_s0 + $0x18] sm:$0xff]  ;;  %v2701_v57 = vpack.c.bf16 %v145_v50, %v145_v50  ;;  %v2525_v60 = vld [vmem:[#allocation3 + $0xf4] ss:$12 sps:$4 sm:$0xff]   ;;  %vm2034_vm5 = vcmask 64512  }
  0x69   :  { %853 = vmatpush1.bf16.msra.mxu0 %v2475_v18  ;;  %v144_v49 = vld [vmem:[%s3106_s0] sm:$0xff]  ;;  %v146_v51 = vld [vmem:[%s3106_s0 + $0x10] sm:$0xff]  ;;  %v2519_v53 = vld [vmem:[#allocation3 + $0x10c] ss:$12 sps:$4 sm:$0xff]  }
  0x6a   :  { %894 = vmatpush1.bf16.msra.mxu1 %v2476_v19  ;;  %854 = vmatprep.subr.bf16.mxu0 %v2477_v20  ;;  %v2248_v54 = vpack.c.bf16 %v147_v52, %v146_v51  ;;  %v2521_v55 = vld [vmem:[#allocation3 + $0x28c] ss:$12 sps:$4 sm:$0xff]   ;;  %v2523_v56 = vld [vmem:[#allocation3 + $0x108] ss:$12 sps:$4 sm:$0xff]   ;;  %v2529_v62 = vld [vmem:[#allocation3 + $0xf0] ss:$12 sps:$4 sm:$0xff]   ;;  %v2999_v13 = vpack.c.bf16 %v144_v49, %v144_v49 }
  0x6b   :  { %895 = vmatprep.subr.bf16.mxu1 %v2479_v21  ;;  %v2524_v58 = vld [vmem:[#allocation3 + $0x288] ss:$12 sps:$4 sm:$0xff]   ;;  %876 = vmatprep.mubr.bf16.mxu0 %v2701_v57  ;;  %v2530_v63 = vld [vmem:[#allocation3 + $0x270] ss:$12 sps:$4 sm:$0xff]   ;;  %v2535_v2 = vld [vmem:[#allocation3 + $0xd8] ss:$12 sps:$4 sm:$0xff]  }
  0x6c   :  { %168 = vst.msk [vmem:[#allocation2 + $0x8] sm:$0xff] %vm2980_vm2, %v2248_v54  ;;  %v2527_v61 = vld [vmem:[#allocation3 + $0x274] ss:$12 sps:$4 sm:$0xff]   ;;  %v2531_v0 = vld [vmem:[#allocation3 + $0xdc] ss:$12 sps:$4 sm:$0xff]  }
  0x6d   :  { %855 = vmatpush1.bf16.msra.mxu0 %v2481_v22  ;;  %170 = vst.msk [vmem:[#allocation2 + $0xc] sm:$0xf] %vm169_vm3, %v2864_v59  ;;  %v2533_v1 = vld [vmem:[#allocation3 + $0x25c] ss:$12 sps:$4 sm:$0xff]   ;;  %v2536_v4 = vld [vmem:[#allocation3 + $0x258] ss:$12 sps:$4 sm:$0xff]  }
  0x6e   :  { %896 = vmatpush1.bf16.msra.mxu1 %v2482_v23  ;;  %856 = vmatprep.subr.bf16.mxu0 %v2483_v24  ;;  %v2537_v6 = vld [vmem:[#allocation3 + $0xc4] ss:$12 sps:$4 sm:$0xff]   ;;  %v2541_v8 = vld [vmem:[#allocation3 + $0xc0] ss:$12 sps:$4 sm:$0xff]   ;;  %v2557_v24 = vld [vmem:[#allocation3 + $0x128] ss:$12 sps:$4 sm:$0xff]  }
  0x6f   :  { %897 = vmatprep.subr.bf16.mxu1 %v2485_v25  ;;  %v2539_v7 = vld [vmem:[#allocation3 + $0x244] ss:$12 sps:$4 sm:$0xff]   ;;  %v2542_v9 = vld [vmem:[#allocation3 + $0x240] ss:$12 sps:$4 sm:$0xff]   ;;  %v2558_v25 = vld [vmem:[#allocation3 + $0x2a8] ss:$12 sps:$4 sm:$0xff]  }
  0x70   :  { %v2545_v10 = vld [vmem:[#allocation3 + $0x170] ss:$12 sps:$4 sm:$0xff]   ;;  %v2549_v16 = vld [vmem:[#allocation3 + $0x158] ss:$12 sps:$4 sm:$0xff]   ;;  %v2553_v20 = vld [vmem:[#allocation3 + $0x140] ss:$12 sps:$4 sm:$0xff]  }
  0x71   :  { %857 = vmatpush1.bf16.msra.mxu0 %v2487_v26  ;;  %v2546_v11 = vld [vmem:[#allocation3 + $0x2f0] ss:$12 sps:$4 sm:$0xff]   ;;  %v2550_v17 = vld [vmem:[#allocation3 + $0x2d8] ss:$12 sps:$4 sm:$0xff]   ;;  %v2554_v21 = vld [vmem:[#allocation3 + $0x2c0] ss:$12 sps:$4 sm:$0xff]  }
  0x72   :  { %898 = vmatpush1.bf16.msra.mxu1 %v2488_v27  ;;  %858 = vmatprep.subr.bf16.mxu0 %v2489_v28  ;;  %v2547_v12 = vld [vmem:[#allocation3 + $0xb0] ss:$12 sps:$4 sm:$0xff]   ;;  %v2551_v18 = vld [vmem:[#allocation3 + $0x98] ss:$12 sps:$4 sm:$0xff]   ;;  %v2555_v22 = vld [vmem:[#allocation3 + $0x80] ss:$12 sps:$4 sm:$0xff]  }
  0x73   :  { %899 = vmatprep.subr.bf16.mxu1 %v2491_v29  ;;  %v2548_v15 = vld [vmem:[#allocation3 + $0x230] ss:$12 sps:$4 sm:$0xff]   ;;  %v2552_v19 = vld [vmem:[#allocation3 + $0x218] ss:$12 sps:$4 sm:$0xff]   ;;  %v2556_v23 = vld [vmem:[#allocation3 + $0x200] ss:$12 sps:$4 sm:$0xff]  }
  0x74   :  { %v172_v3 = vld [vmem:[#allocation2 + $0x8] sm:$0xff]  ;;  %v2559_v26 = vld [vmem:[#allocation3 + $0x68] ss:$12 sps:$4 sm:$0xff]   ;;  %v2588_v50 = vld [vmem:[#allocation5 + $0x44] ss:$8 sps:$4 sm:$0xff]  }
  0x75   :  { %859 = vmatpush1.bf16.msra.mxu0 %v2493_v30  ;;  %v2049_v5 = vcombine.high %v172_v3, %v172_v3  ;;  %v3001_v14 = vcombine.low %v172_v3, %v172_v3  ;;  %v2560_v27 = vld [vmem:[#allocation3 + $0x1e8] ss:$12 sps:$4 sm:$0xff]   ;;  %v2561_v28 = vld [vmem:[#allocation3 + $0x110] ss:$12 sps:$4 sm:$0xff]   ;;  %v2594_v54 = vld [vmem:[#allocation5 + $0x24] ss:$8 sps:$4 sm:$0xff]  }
  0x76   :  { %900 = vmatpush1.bf16.msra.mxu1 %v2494_v31  ;;  %860 = vmatprep.subr.bf16.mxu0 %v2495_v32  ;;  %v2562_v29 = vld [vmem:[#allocation3 + $0x290] ss:$12 sps:$4 sm:$0xff]   ;;  %v2565_v32 = vld [vmem:[#allocation3 + $0xf8] ss:$12 sps:$4 sm:$0xff]   ;;  %v2586_v51 = vld [vmem:[#allocation5 + $0x40] ss:$8 sps:$4 sm:$0xff]  }
  0x77   :  { %901 = vmatprep.subr.bf16.mxu1 %v2497_v33  ;;  %917 = vmatprep.mubr.bf16.mxu1 %v2049_v5  ;;  %v2563_v30 = vld [vmem:[#allocation3 + $0x50] ss:$12 sps:$4 sm:$0xff]   ;;  %v2566_v33 = vld [vmem:[#allocation3 + $0x278] ss:$12 sps:$4 sm:$0xff]   ;;  %v2610_v3 = vld [vmem:[#allocation5 + $0xc0] ss:$8 sps:$4 sm:$0xff]  }
  0x78   :  { %v2564_v31 = vld [vmem:[#allocation3 + $0x1d0] ss:$12 sps:$4 sm:$0xff]  }
  0x79   :  { %861 = vmatpush2.bf16.msra.mxu0 %v2499_v34  ;;  %v2567_v34 = vld [vmem:[#allocation3 + $0x38] ss:$12 sps:$4 sm:$0xff]   ;;  %v2579_v44 = vld [vmem:[#allocation5 + $0x74] ss:$8 sps:$4 sm:$0xff]  }
  0x7a   :  { %902 = vmatpush2.bf16.msra.mxu1 %v2500_v35  ;;  %862 = vmatprep.subr.bf16.mxu0 %v2501_v36  ;;  %v2568_v35 = vld [vmem:[#allocation3 + $0x1b8] ss:$12 sps:$4 sm:$0xff]   ;;  %v2569_v36 = vld [vmem:[#allocation3 + $0xe0] ss:$12 sps:$4 sm:$0xff]   ;;  %v2591_v52 = vld [vmem:[#allocation5 + $0x34] ss:$8 sps:$4 sm:$0xff]  }
  0x7b   :  { %903 = vmatprep.subr.bf16.mxu1 %v2503_v37  ;;  %v2570_v37 = vld [vmem:[#allocation3 + $0x260] ss:$12 sps:$4 sm:$0xff]   ;;  %v2583_v49 = vld [vmem:[#allocation5 + $0x50] ss:$8 sps:$4 sm:$0xff]  }
  0x7d   :  { %863 = vmatpush2.bf16.msra.mxu0 %v2505_v38  ;;  %v2571_v38 = vld [vmem:[#allocation3 + $0x20] ss:$12 sps:$4 sm:$0xff]  }
  0x7e   :  { %904 = vmatpush2.bf16.msra.mxu1 %v2506_v39  ;;  %864 = vmatprep.subr.bf16.mxu0 %v2507_v40  ;;  %v2572_v39 = vld [vmem:[#allocation3 + $0x1a0] ss:$12 sps:$4 sm:$0xff]   ;;  %v2573_v40 = vld [vmem:[#allocation3 + $0xc8] ss:$12 sps:$4 sm:$0xff]  }
  0x7f   :  { %905 = vmatprep.subr.bf16.mxu1 %v2509_v41  ;;  %v2574_v41 = vld [vmem:[#allocation3 + $0x248] ss:$12 sps:$4 sm:$0xff]  }
  0x81   :  { %865 = vmatpush2.bf16.msra.mxu0 %v2511_v42  ;;  %v2575_v42 = vld [vmem:[#allocation3 + $0x8] ss:$12 sps:$4 sm:$0xff]  }
  0x82   :  { %906 = vmatpush2.bf16.msra.mxu1 %v2512_v43  ;;  %866 = vmatprep.subr.bf16.mxu0 %v2513_v45  ;;  %v2576_v43 = vld [vmem:[#allocation3 + $0x188] ss:$12 sps:$4 sm:$0xff]   ;;  %v2577_v45 = vld [vmem:[#allocation5 + $0x70] ss:$8 sps:$4 sm:$0xff]  }
  0x83   :  { %907 = vmatprep.subr.bf16.mxu1 %v2515_v46  ;;  %v2582_v46 = vld [vmem:[#allocation5 + $0x64] ss:$8 sps:$4 sm:$0xff]  }
  0x85   :  { %867 = vmatpush2.bf16.msra.mxu0 %v2517_v47  ;;  %v2580_v47 = vld [vmem:[#allocation5 + $0x60] ss:$8 sps:$4 sm:$0xff]  }
  0x86   :  { %908 = vmatpush2.bf16.msra.mxu1 %v2518_v48  ;;  %868 = vmatprep.subr.bf16.mxu0 %v2519_v53  ;;  %v2585_v48 = vld [vmem:[#allocation5 + $0x54] ss:$8 sps:$4 sm:$0xff]   ;;  %v2589_v53 = vld [vmem:[#allocation5 + $0x30] ss:$8 sps:$4 sm:$0xff]  }
  0x87   :  { %909 = vmatprep.subr.bf16.mxu1 %v2521_v55  ;;  %v2592_v55 = vld [vmem:[#allocation5 + $0x20] ss:$8 sps:$4 sm:$0xff]  }
  0x89   :  { %869 = vmatpush2.bf16.msra.mxu0 %v2523_v56  ;;  %v2597_v56 = vld [vmem:[#allocation5 + $0x14] ss:$8 sps:$4 sm:$0xff]  }
  0x8a   :  { %910 = vmatpush2.bf16.msra.mxu1 %v2524_v58  ;;  %870 = vmatprep.subr.bf16.mxu0 %v2525_v60  ;;  %v2600_v58 = vld [vmem:[#allocation5 + $0x4] ss:$8 sps:$4 sm:$0xff]   ;;  %v2603_v60 = vld [vmem:[#allocation5 + $0xf4] ss:$8 sps:$4 sm:$0xff]  }
  0x8b   :  { %911 = vmatprep.subr.bf16.mxu1 %v2527_v61  ;;  %v2601_v61 = vld [vmem:[#allocation5 + $0xf0] ss:$8 sps:$4 sm:$0xff]  }
  0x8d   :  { %871 = vmatpush2.bf16.msra.mxu0 %v2529_v62  ;;  %v2606_v62 = vld [vmem:[#allocation5 + $0xe4] ss:$8 sps:$4 sm:$0xff]  }
  0x8e   :  { %912 = vmatpush2.bf16.msra.mxu1 %v2530_v63  ;;  %872 = vmatprep.subr.bf16.mxu0 %v2531_v0  ;;  %v2604_v63 = vld [vmem:[#allocation5 + $0xe0] ss:$8 sps:$4 sm:$0xff]   ;;  %v2609_v0 = vld [vmem:[#allocation5 + $0xd4] ss:$8 sps:$4 sm:$0xff]  }
  0x8f   :  { %913 = vmatprep.subr.bf16.mxu1 %v2533_v1  ;;  %v2607_v1 = vld [vmem:[#allocation5 + $0xd0] ss:$8 sps:$4 sm:$0xff]  }
  0x91   :  { %873 = vmatpush2.bf16.msra.mxu0 %v2535_v2  ;;  %v2612_v2 = vld [vmem:[#allocation5 + $0xc4] ss:$8 sps:$4 sm:$0xff]  }
  0x92   :  { %914 = vmatpush2.bf16.msra.mxu1 %v2536_v4  ;;  %874 = vmatprep.subr.bf16.mxu0 %v2537_v6  ;;  %v2615_v4 = vld [vmem:[#allocation5 + $0xb4] ss:$8 sps:$4 sm:$0xff]   ;;  %v2625_v6 = vld [vmem:[#allocation5 + $0x170] ss:$8 sps:$4 sm:$0xff]  }
  0x93   :  { %915 = vmatprep.subr.bf16.mxu1 %v2539_v7  ;;  %v2630_v7 = vld [vmem:[#allocation5 + $0x164] ss:$8 sps:$4 sm:$0xff]  }
  0x95   :  { %875 = vmatpush2.bf16.msra.mxu0 %v2541_v8  ;;  %v2613_v8 = vld [vmem:[#allocation5 + $0xb0] ss:$8 sps:$4 sm:$0xff]  }
  0x96   :  { %916 = vmatpush2.bf16.msra.mxu1 %v2542_v9  ;;  %2249 = vmatprep.subr.bf16.mxu0 %v2545_v10  ;;  %v2618_v9 = vld [vmem:[#allocation5 + $0xa4] ss:$8 sps:$4 sm:$0xff]   ;;  %v2628_v10 = vld [vmem:[#allocation5 + $0x160] ss:$8 sps:$4 sm:$0xff]  }
  0x97   :  { %2271 = vmatprep.subr.bf16.mxu1 %v2546_v11  ;;  %v2633_v11 = vld [vmem:[#allocation5 + $0x154] ss:$8 sps:$4 sm:$0xff]  }
  0x98   :  { %877 = vmatmul.mubr.bf16.vlgmr.msra.gmra.mxu0 %v2999_v13 }
  0x99   :  { %918 = vmatmul.mubr.bf16.vlgmr.msra.gmra.mxu1 %v3001_v14  ;;  %2250 = vmatpush3.bf16.msra.mxu0 %v2547_v12  ;;  %v2616_v12 = vld [vmem:[#allocation5 + $0xa0] ss:$8 sps:$4 sm:$0xff]  }
  0x9a   :  { %2272 = vmatpush3.bf16.msra.mxu1 %v2548_v15  ;;  %2251 = vmatprep.subr.bf16.mxu0 %v2549_v16  ;;  %v2636_v15 = vld [vmem:[#allocation5 + $0x144] ss:$8 sps:$4 sm:$0xff]   ;;  %v2619_v16 = vld [vmem:[#allocation5 + $0x90] ss:$8 sps:$4 sm:$0xff]  }
  0x9b   :  { %2273 = vmatprep.subr.bf16.mxu1 %v2550_v17  ;;  %958 = vmatprep.mubr.bf16.mxu0 %v2701_v57  ;;  %v2595_v57 = vld [vmem:[#allocation5 + $0x10] ss:$8 sps:$4 sm:$0xff]   ;;  %v2624_v17 = vld [vmem:[#allocation5 + $0x84] ss:$8 sps:$4 sm:$0xff]  }
  0x9c   :  { %998 = vmatprep.mubr.bf16.mxu1 %v2049_v5  ;;  %v2627_v5 = vld [vmem:[#allocation5 + $0x174] ss:$8 sps:$4 sm:$0xff]  }
  0x9d   :  { %2252 = vmatpush3.bf16.msra.mxu0 %v2551_v18  ;;  %v2634_v18 = vld [vmem:[#allocation5 + $0x140] ss:$8 sps:$4 sm:$0xff]  }
  0x9e   :  { %2274 = vmatpush3.bf16.msra.mxu1 %v2552_v19  ;;  %2253 = vmatprep.subr.bf16.mxu0 %v2553_v20  ;;  %v2639_v19 = vld [vmem:[#allocation5 + $0x134] ss:$8 sps:$4 sm:$0xff]   ;;  %v2622_v20 = vld [vmem:[#allocation5 + $0x80] ss:$8 sps:$4 sm:$0xff]  }
  0x9f   :  { %2275 = vmatprep.subr.bf16.mxu1 %v2554_v21  ;;  %v2637_v21 = vld [vmem:[#allocation5 + $0x130] ss:$8 sps:$4 sm:$0xff]  }
  0xa1   :  { %2254 = vmatpush3.bf16.msra.mxu0 %v2555_v22  ;;  %v2642_v22 = vld [vmem:[#allocation5 + $0x124] ss:$8 sps:$4 sm:$0xff]  }
  0xa2   :  { %2276 = vmatpush3.bf16.msra.mxu1 %v2556_v23  ;;  %2255 = vmatprep.subr.bf16.mxu0 %v2557_v24  ;;  %v2640_v23 = vld [vmem:[#allocation5 + $0x120] ss:$8 sps:$4 sm:$0xff]   ;;  %v2645_v24 = vld [vmem:[#allocation5 + $0x114] ss:$8 sps:$4 sm:$0xff]  }
  0xa3   :  { %2277 = vmatprep.subr.bf16.mxu1 %v2558_v25  ;;  %v2643_v25 = vld [vmem:[#allocation5 + $0x110] ss:$8 sps:$4 sm:$0xff]  }
  0xa5   :  { %2256 = vmatpush3.bf16.msra.mxu0 %v2559_v26  ;;  %v2648_v26 = vld [vmem:[#allocation5 + $0x104] ss:$8 sps:$4 sm:$0xff]  }
  0xa6   :  { %2278 = vmatpush3.bf16.msra.mxu1 %v2560_v27  ;;  %2257 = vmatprep.subr.bf16.mxu0 %v2561_v28  ;;  %v2646_v27 = vld [vmem:[#allocation5 + $0x100] ss:$8 sps:$4 sm:$0xff]   ;;  %v303_v28 = vlaneseq }
  0xa7   :  { %2279 = vmatprep.subr.bf16.mxu1 %v2562_v29 }
  0xa8   :  { %v3008_v29 = vshrl.u32 %v303_v28, 7 }
  0xa9   :  { %2258 = vmatpush3.bf16.msra.mxu0 %v2563_v30 }
  0xaa   :  { %2280 = vmatpush3.bf16.msra.mxu1 %v2564_v31  ;;  %2259 = vmatprep.subr.bf16.mxu0 %v2565_v32  ;;  %v305_v30 = vsub.s32 0, %v3008_v29  ;;  %v301_v31 = vld [vmem:[%s3108_s2] sm:$0x7]  ;;  %v309_v32 = vsub.s32 1, %v3008_v29 }
  0xab   :  { %2281 = vmatprep.subr.bf16.mxu1 %v2566_v33 }
  0xac   :  { %v306_v33 = vrot.slane %v301_v31, %v305_v30 }
  0xad   :  { %2260 = vmatpush3.bf16.msra.mxu0 %v2567_v34  ;;  %v310_v34 = vrot.slane %v301_v31, %v309_v32 }
  0xae   :  { %2282 = vmatpush3.bf16.msra.mxu1 %v2568_v35  ;;  %2261 = vmatprep.subr.bf16.mxu0 %v2569_v36 }
  0xaf   :  { %2283 = vmatprep.subr.bf16.mxu1 %v2570_v37 }
  0xb1   :  { %2262 = vmatpush3.bf16.msra.mxu0 %v2571_v38 }
  0xb2   :  { %2284 = vmatpush3.bf16.msra.mxu1 %v2572_v39  ;;  %2263 = vmatprep.subr.bf16.mxu0 %v2573_v40 }
  0xb3   :  { %2285 = vmatprep.subr.bf16.mxu1 %v2574_v41 }
  0xb5   :  { %2264 = vmatpush3.bf16.msra.mxu0 %v2575_v42 }
  0xb6   :  { %2286 = vmatpush3.bf16.msra.mxu1 %v2576_v43  ;;  %1312 = vmatprep.subr.bf16.mxu0 %v2579_v44 }
  0xb7   :  { %1353 = vmatprep.subr.bf16.mxu1 %v2627_v5  ;;  %v2651_v5 = vld [vmem:[#allocation7 + $0x70] sm:$0xff]  }
  0xb8   :  { %959 = vmatmul.mubr.bf16.vlgmr.msra.gmra.mxu0 %v2999_v13  ;;  %v2621_v13 = vld [vmem:[#allocation5 + $0x94] ss:$8 sps:$4 sm:$0xff]  }
  0xb9   :  { %999 = vmatmul.mubr.bf16.vlgmr.msra.gmra.mxu1 %v3001_v14  ;;  %1313 = vmatpush1.bf16.msra.mxu0 %v2577_v45  ;;  %v2631_v14 = vld [vmem:[#allocation5 + $0x150] ss:$8 sps:$4 sm:$0xff]  }
  0xba   :  { %1385 = vmatprep.mubr.bf16.mxu1 %v2864_v59  ;;  %1314 = vmatprep.subr.bf16.mxu0 %v2582_v46  ;;  %v2598_v59 = vld [vmem:[#allocation5] ss:$8 sps:$4 sm:$0xff]  }
  0xbb   :  { %1354 = vmatpush1.bf16.msra.mxu1 %v2625_v6  ;;  %v2652_v6 = vld [vmem:[#allocation7 + $0x30] sm:$0xff]  }
  0xbc   :  { %1355 = vmatprep.subr.bf16.mxu1 %v2630_v7  ;;  %v2653_v7 = vld [vmem:[#allocation7 + $0x68] sm:$0xff]  }
  0xbd   :  { %1315 = vmatpush1.bf16.msra.mxu0 %v2580_v47 }
  0xbe   :  { %1316 = vmatprep.subr.bf16.mxu0 %v2585_v48 }
  0xbf   :  { %1356 = vmatpush1.bf16.msra.mxu1 %v2628_v10  ;;  %v2656_v10 = vld [vmem:[#allocation7 + $0x20] sm:$0xff]  }
  0xc0   :  { %1357 = vmatprep.subr.bf16.mxu1 %v2633_v11  ;;  %v2657_v11 = vld [vmem:[#allocation7 + $0x58] sm:$0xff]  }
  0xc1   :  { %1317 = vmatpush1.bf16.msra.mxu0 %v2583_v49 }
  0xc2   :  { %1318 = vmatprep.subr.bf16.mxu0 %v2588_v50 }
  0xc3   :  { %1358 = vmatpush1.bf16.msra.mxu1 %v2631_v14  ;;  %v2660_v14 = vld [vmem:[#allocation7 + $0x10] sm:$0xff]  }
  0xc4   :  { %1359 = vmatprep.subr.bf16.mxu1 %v2636_v15  ;;  %v2661_v15 = vld [vmem:[#allocation7 + $0x48] sm:$0xff]  }
  0xc5   :  { %1319 = vmatpush1.bf16.msra.mxu0 %v2586_v51  ;;  %v313_v51 = vsub.s32 2, %v3008_v29  ;;  %v2671_v29 = vld [vmem:[%s3113_s7 + $0x8] sm:$0xff]  }
  0xc6   :  { %1320 = vmatprep.subr.bf16.mxu0 %v2591_v52 }
  0xc7   :  { %1360 = vmatpush1.bf16.msra.mxu1 %v2634_v18  ;;  %v2664_v18 = vld [vmem:[#allocation7] sm:$0xff]  }
  0xc8   :  { %1361 = vmatprep.subr.bf16.mxu1 %v2639_v19  ;;  %v2665_v19 = vld [vmem:[%s3113_s7 + $0x38] sm:$0xff]  }
  0xc9   :  { %1321 = vmatpush1.bf16.msra.mxu0 %v2589_v53 }
  0xca   :  { %1322 = vmatprep.subr.bf16.mxu0 %v2594_v54  ;;  %v314_v54 = vrot.slane %v301_v31, %v313_v51  ;;  %v1060_v31 = vld [vmem:[%s3110_s4] sm:$0x3]  ;;  %v2677_v51 = vld [vmem:[#allocation10 + $0x18] sm:$0xff]  }
  0xcb   :  { %1362 = vmatpush1.bf16.msra.mxu1 %v2637_v21  ;;  %v2666_v21 = vld [vmem:[%s3113_s7 + $0x30] sm:$0xff]  }
  0xcc   :  { %1363 = vmatprep.subr.bf16.mxu1 %v2642_v22  ;;  %v2667_v22 = vld [vmem:[%s3113_s7 + $0x28] sm:$0xff]  }
  0xcd   :  { %1323 = vmatpush1.bf16.msra.mxu0 %v2592_v55 }
  0xce   :  { %1324 = vmatprep.subr.bf16.mxu0 %v2597_v56 }
  0xcf   :  { %1364 = vmatpush1.bf16.msra.mxu1 %v2640_v23  ;;  %v2668_v23 = vld [vmem:[%s3113_s7 + $0x20] sm:$0xff]  }
  0xd0   :  { %1365 = vmatprep.subr.bf16.mxu1 %v2645_v24  ;;  %v2669_v24 = vld [vmem:[%s3113_s7 + $0x18] sm:$0xff]  }
  0xd1   :  { %1325 = vmatpush1.bf16.msra.mxu0 %v2595_v57 }
  0xd2   :  { %1326 = vmatprep.subr.bf16.mxu0 %v2600_v58 }
  0xd3   :  { %1366 = vmatpush1.bf16.msra.mxu1 %v2643_v25 }
  0xd4   :  { %1367 = vmatprep.subr.bf16.mxu1 %v2648_v26 }
  0xd5   :  { %1327 = vmatpush1.bf16.msra.mxu0 %v2598_v59 }
  0xd6   :  { %1328 = vmatprep.subr.bf16.mxu0 %v2603_v60 }
  0xd7   :  { %1368 = vmatpush1.bf16.msra.mxu1 %v2646_v27 }
  0xd9   :  { %1329 = vmatpush2.bf16.msra.mxu0 %v2601_v61 }
  0xda   :  { %1330 = vmatprep.subr.bf16.mxu0 %v2606_v62 }
  0xdd   :  { %1331 = vmatpush2.bf16.msra.mxu0 %v2604_v63 }
  0xde   :  { %1332 = vmatprep.subr.bf16.mxu0 %v2609_v0 }
  0xe1   :  { %1333 = vmatpush2.bf16.msra.mxu0 %v2607_v1 }
  0xe2   :  { %1334 = vmatprep.subr.bf16.mxu0 %v2612_v2 }
  0xe5   :  { %1335 = vmatpush2.bf16.msra.mxu0 %v2610_v3  ;;  %v2649_v3 = vld [vmem:[#allocation7 + $0x78] sm:$0xff]  }
  0xe6   :  { %1336 = vmatprep.subr.bf16.mxu0 %v2615_v4  ;;  %v2650_v4 = vld [vmem:[#allocation7 + $0x38] sm:$0xff]   ;;  %2293 = vmatprep.subr.bf16.mxu1 %v2649_v3  ;;  %v2684_v3 = vld [vmem:[#allocation11 + $0x20] sm:$0xff]  }
  0xe9   :  { %1337 = vmatpush2.bf16.msra.mxu0 %v2613_v8  ;;  %v2654_v8 = vld [vmem:[#allocation7 + $0x28] sm:$0xff]  }
  0xea   :  { %1338 = vmatprep.subr.bf16.mxu0 %v2618_v9  ;;  %v2655_v9 = vld [vmem:[#allocation7 + $0x60] sm:$0xff]  }
  0xed   :  { %1339 = vmatpush2.bf16.msra.mxu0 %v2616_v12  ;;  %v2658_v12 = vld [vmem:[#allocation7 + $0x18] sm:$0xff]  }
  0xee   :  { %1340 = vmatprep.subr.bf16.mxu0 %v2621_v13  ;;  %v2659_v13 = vld [vmem:[#allocation7 + $0x50] sm:$0xff]  }
  0xf1   :  { %1341 = vmatpush2.bf16.msra.mxu0 %v2619_v16  ;;  %v2662_v16 = vld [vmem:[#allocation7 + $0x8] sm:$0xff]  }
  0xf2   :  { %1342 = vmatprep.subr.bf16.mxu0 %v2624_v17  ;;  %v2663_v17 = vld [vmem:[#allocation7 + $0x40] sm:$0xff]  }
  0xf5   :  { %1343 = vmatpush2.bf16.msra.mxu0 %v2622_v20  ;;  %v2865_v20 = vmov 0.0  }
  0xf6   :  { %2351 = vmatprep.subr.bf16.mxu0 %v2865_v20 }
 0x158   :  { %v878_v35 = vpop.f32.mrf.mxu0 }
 0x159   :  { %v919_v36 = vpop.f32.mrf.mxu1  ;;  %v879_v37 = vadd.f32 %v878_v35, %v306_v33  ;;  %v1065_v33 = vrot.slane %v1060_v31, %v305_v30  ;;  %v2670_v30 = vld [vmem:[%s3113_s7 + $0x10] sm:$0xff]  }
 0x15a   :  { %v880_v38 = vpop.f32.mrf.mxu0 }
 0x15b   :  { %v921_v39 = vpop.f32.mrf.mxu1  ;;  %v920_v40 = vadd.f32 %v919_v36, %v879_v37  ;;  %v881_v41 = vadd.f32 %v880_v38, %v310_v34  ;;  %v1069_v34 = vrot.slane %v1060_v31, %v309_v32  ;;  %v2672_v32 = vld [vmem:[%s3113_s7] sm:$0xff]  }
 0x15c   :  { %v882_v42 = vpop.f32.mrf.mxu0 }
 0x15d   :  { %v923_v43 = vpop.f32.mrf.mxu1  ;;  %v922_v44 = vadd.f32 %v921_v39, %v881_v41  ;;  %v1006_v45 = vmax.f32 %v920_v40, 0.0 }
 0x15e   :  { %v883_v46 = vpop.f32.mrf.mxu0 }
 0x15f   :  { %v924_v47 = vpop.f32.mrf.mxu1  ;;  %v1007_v48 = vmax.f32 %v922_v44, 0.0  ;;  %v1009_v50 = vpack.c.bf16 %v1006_v45, %v1006_v45 }
 0x160   :  { %v2673_v47 = vld [vmem:[#allocation10 + $0x38] sm:$0xff]  }
 0x161   :  { %v1010_v49 = vpack.c.bf16 %v1007_v48, %v1007_v48  ;;  %v2674_v48 = vld [vmem:[#allocation10 + $0x30] sm:$0xff]  }
 0x163   :  { %1344 = vmatprep.mubr.bf16.mxu0 %v1010_v49  ;;  %v2675_v49 = vld [vmem:[#allocation10 + $0x28] sm:$0xff]  }
 0x164   :  { %1345 = vmatmul.mubr.bf16.vlgmr.msra.gmra.mxu0 %v1009_v50  ;;  %v2676_v50 = vld [vmem:[#allocation10 + $0x20] sm:$0xff]  }
 0x165   :  { %2352 = vmatpush3.bf16.msra.mxu0 %v2665_v19  ;;  %2367 = vmatprep.mubr.msk.bf16.mxu0 %vm2866_vm4, %v2865_v20  ;;  %v2691_v19 = vld [vmem:[#allocation13 + $0x28] sm:$0xff]  }
 0x166   :  { %2353 = vmatprep.subr.bf16.mxu0 %v2865_v20 }
 0x169   :  { %2354 = vmatpush3.bf16.msra.mxu0 %v2666_v21  ;;  %v2692_v21 = vld [vmem:[#allocation13 + $0x20] sm:$0xff]  }
 0x16a   :  { %2355 = vmatprep.subr.bf16.mxu0 %v2865_v20 }
 0x16d   :  { %2356 = vmatpush3.bf16.msra.mxu0 %v2667_v22  ;;  %v2693_v22 = vld [vmem:[#allocation13 + $0x18] sm:$0xff]  }
 0x16e   :  { %2357 = vmatprep.subr.bf16.mxu0 %v2865_v20 }
 0x171   :  { %2358 = vmatpush3.bf16.msra.mxu0 %v2668_v23  ;;  %v2694_v23 = vld [vmem:[#allocation13 + $0x10] sm:$0xff]  }
 0x172   :  { %2359 = vmatprep.subr.bf16.mxu0 %v2865_v20 }
 0x175   :  { %2360 = vmatpush3.bf16.msra.mxu0 %v2669_v24  ;;  %v2220_v24 = vld [vmem:[%s3116_s10] ss:$0 sm:$0xff] }
 0x176   :  { %2361 = vmatprep.subr.bf16.mxu0 %v2865_v20 }
 0x178   :  { %v2265_v52 = vpop.f32.mrf.mxu0 }
 0x179   :  { %v2287_v53 = vpop.f32.mrf.mxu1  ;;  %2362 = vmatpush3.bf16.msra.mxu0 %v2670_v30  ;;  %v2238_v30 = vld [vmem:[%s3120_s14] ss:$0 sm:$0xff] }
 0x17a   :  { %v2266_v55 = vpop.f32.mrf.mxu0  ;;  %2363 = vmatprep.subr.bf16.mxu0 %v2865_v20 }
 0x17b   :  { %v2288_v56 = vpop.f32.mrf.mxu1  ;;  %v2267_v57 = vadd.f32 %v2266_v55, %v2265_v52  ;;  %v2678_v52 = vld [vmem:[#allocation10 + $0x10] sm:$0xff]  }
 0x17c   :  { %v2268_v58 = vpop.f32.mrf.mxu0  ;;  %v2289_v61 = vadd.f32 %v2288_v56, %v2287_v53 }
 0x17d   :  { %v2290_v59 = vpop.f32.mrf.mxu1  ;;  %v961_v60 = vadd.f32 %v2267_v57, %v314_v54  ;;  %2364 = vmatpush3.bf16.msra.mxu0 %v2671_v29  ;;  %v2194_v54 = vld [vmem:[#allocation8] ss:$0 sm:$0xff] }
 0x17e   :  { %v2269_v62 = vpop.f32.mrf.mxu0  ;;  %2365 = vmatprep.subr.bf16.mxu0 %v2865_v20 }
 0x17f   :  { %v2291_v63 = vpop.f32.mrf.mxu1  ;;  %v1001_v0 = vadd.f32 %v2289_v61, %v961_v60  ;;  %v2679_v62 = vld [vmem:[#allocation10 + $0x8] sm:$0xff]  }
 0x180   :  { %v2680_v63 = vld [vmem:[#allocation10] sm:$0xff]  }
 0x181   :  { %v1008_v1 = vmax.f32 %v1001_v0, 0.0  ;;  %2366 = vmatpush3.bf16.msra.mxu0 %v2672_v32  ;;  %v2681_v0 = vld [vmem:[#allocation11 + $0x38] sm:$0xff]  }
 0x182   :  { %2391 = vmatprep.subr.bf16.mxu0 %v2865_v20 }
 0x183   :  { %v1011_v2 = vpack.c.bf16 %v1008_v1, %v1008_v1  ;;  %v2682_v1 = vld [vmem:[#allocation11 + $0x30] sm:$0xff]  }
 0x185   :  { %1386 = vmatmul.mubr.bf16.vlgmr.msra.gmra.mxu1 %v1011_v2  ;;  %v2683_v2 = vld [vmem:[#allocation11 + $0x28] sm:$0xff]  }
 0x186   :  { %2294 = vmatpush3.bf16.msra.mxu1 %v2650_v4  ;;  %v2685_v4 = vld [vmem:[#allocation11 + $0x18] sm:$0xff]  }
 0x187   :  { %2295 = vmatprep.subr.bf16.mxu1 %v2651_v5  ;;  %v2686_v5 = vld [vmem:[#allocation11 + $0x10] sm:$0xff]  }
 0x18a   :  { %2296 = vmatpush3.bf16.msra.mxu1 %v2652_v6  ;;  %v2211_v6 = vld [vmem:[%s3114_s8] ss:$0 sm:$0xff] }
 0x18b   :  { %2297 = vmatprep.subr.bf16.mxu1 %v2653_v7 }
 0x18e   :  { %2298 = vmatpush3.bf16.msra.mxu1 %v2654_v8 }
 0x18f   :  { %2299 = vmatprep.subr.bf16.mxu1 %v2655_v9 }
 0x192   :  { %2300 = vmatpush3.bf16.msra.mxu1 %v2656_v10 }
 0x193   :  { %2301 = vmatprep.subr.bf16.mxu1 %v2657_v11 }
 0x196   :  { %2302 = vmatpush3.bf16.msra.mxu1 %v2658_v12 }
 0x197   :  { %2303 = vmatprep.subr.bf16.mxu1 %v2659_v13 }
 0x19a   :  { %2304 = vmatpush3.bf16.msra.mxu1 %v2660_v14 }
 0x19b   :  { %2305 = vmatprep.subr.bf16.mxu1 %v2661_v15  ;;  %v2687_v15 = vld [vmem:[#allocation11 + $0x8] sm:$0xff]  }
 0x19e   :  { %2306 = vmatpush3.bf16.msra.mxu1 %v2662_v16  ;;  %v2688_v16 = vld [vmem:[#allocation11] sm:$0xff]  }
 0x19f   :  { %2307 = vmatprep.subr.bf16.mxu1 %v2663_v17  ;;  %v2689_v17 = vld [vmem:[#allocation13 + $0x38] sm:$0xff]  }
 0x1a2   :  { %2308 = vmatpush3.bf16.msra.mxu1 %v2664_v18  ;;  %v2690_v18 = vld [vmem:[#allocation13 + $0x30] sm:$0xff]  }
 0x1a3   :  { %2371 = vmatprep.subr.bf16.mxu1 %v2865_v20 }
 0x224   :  { %v1346_v25 = vpop.f32.mrf.mxu0 }
 0x225   :  { %v1347_v35 = vadd.f32 %v1346_v25, %v1065_v33 }
 0x226   :  { %v1348_v26 = vpop.f32.mrf.mxu0 }
 0x227   :  { %v1349_v37 = vadd.f32 %v1348_v26, %v1069_v34 }
 0x228   :  { %v1350_v27 = vpop.f32.mrf.mxu0 }
 0x22a   :  { %v1351_v28 = vpop.f32.mrf.mxu0 }
 0x245   :  { %v1387_v36 = vpop.f32.mrf.mxu1 }
 0x246   :  { %v1388_v38 = vadd.f32 %v1387_v36, %v1347_v35  ;;  %v2695_v36 = vld [vmem:[#allocation13 + $0x8] sm:$0xff]  }
 0x247   :  { %v1389_v39 = vpop.f32.mrf.mxu1 }
 0x248   :  { %v1390_v40 = vadd.f32 %v1389_v39, %v1349_v37  ;;  %v1394_v41 = vmax.f32 %v1388_v38, 0.0  ;;  %v2696_v37 = vld [vmem:[#allocation13] sm:$0xff]   ;;  %v2229_v38 = vld [vmem:[%s3118_s12] ss:$0 sm:$0xff] }
 0x249   :  { %v1391_v42 = vpop.f32.mrf.mxu1 }
 0x24a   :  { %v1395_v43 = vmax.f32 %v1390_v40, 0.0  ;;  %v1396_v46 = vpack.c.bf16 %v1394_v41, %v1394_v41 }
 0x24b   :  { %v1392_v44 = vpop.f32.mrf.mxu1 }
 0x24c   :  { %v1397_v45 = vpack.c.bf16 %v1395_v43, %v1395_v43 }
 0x24e   :  { %1565 = vmatprep.mubr.bf16.mxu1 %v1397_v45 }
 0x24f   :  { %1566 = vmatmul.mubr.bf16.vlgmr.msra.gmra.mxu1 %v1396_v46 }
 0x250   :  { %2387 = vmatprep.mubr.msk.bf16.mxu1 %vm2866_vm4, %v2865_v20  ;;  %2372 = vmatpush3.bf16.msra.mxu1 %v2673_v47 }
 0x251   :  { %2373 = vmatprep.subr.bf16.mxu1 %v2865_v20 }
 0x254   :  { %2374 = vmatpush3.bf16.msra.mxu1 %v2674_v48 }
 0x255   :  { %2375 = vmatprep.subr.bf16.mxu1 %v2865_v20 }
 0x258   :  { %2376 = vmatpush3.bf16.msra.mxu1 %v2675_v49 }
 0x259   :  { %2377 = vmatprep.subr.bf16.mxu1 %v2865_v20 }
 0x25c   :  { %2378 = vmatpush3.bf16.msra.mxu1 %v2676_v50 }
 0x25d   :  { %2379 = vmatprep.subr.bf16.mxu1 %v2865_v20 }
 0x260   :  { %2380 = vmatpush3.bf16.msra.mxu1 %v2677_v51 }
 0x261   :  { %2381 = vmatprep.subr.bf16.mxu1 %v2865_v20 }
 0x264   :  { %2382 = vmatpush3.bf16.msra.mxu1 %v2678_v52 }
 0x265   :  { %2383 = vmatprep.subr.bf16.mxu1 %v2865_v20 }
 0x268   :  { %2384 = vmatpush3.bf16.msra.mxu1 %v2679_v62 }
 0x269   :  { %2385 = vmatprep.subr.bf16.mxu1 %v2865_v20 }
 0x26c   :  { %2386 = vmatpush3.bf16.msra.mxu1 %v2680_v63 }
 0x26d   :  { %2411 = vmatprep.subr.bf16.mxu1 %v2865_v20 }
 0x30f   :  { %v2309_v53 = vpop.f32.mrf.mxu1 }
 0x311   :  { %v2310_v55 = vpop.f32.mrf.mxu1 }
 0x312   :  { %v2311_v56 = vadd.f32 %v2310_v55, %v2309_v53 }
 0x313   :  { %v2312_v57 = vpop.f32.mrf.mxu1 }
 0x314   :  { %v1568_v58 = vadd.f32 %v2311_v56, %v2194_v54 }
 0x315   :  { %v2313_v59 = vpop.f32.mrf.mxu1 }
 0x316   :  { %v1573_v60 = vmax.f32 %v1568_v58, 0.0 }
 0x318   :  { %v1574_v61 = vpack.c.bf16 %v1573_v60, %v1573_v60 }
 0x31a   :  { %2368 = vmatmul.mubr.bf16.vlgmr.msra.gmra.mxu0 %v1574_v61 }
 0x31b   :  { %2407 = vmatprep.mubr.msk.bf16.mxu0 %vm2866_vm4, %v2865_v20  ;;  %2392 = vmatpush3.bf16.msra.mxu0 %v2681_v0 }
 0x31c   :  { %2393 = vmatprep.subr.bf16.mxu0 %v2865_v20 }
 0x31f   :  { %2394 = vmatpush3.bf16.msra.mxu0 %v2682_v1 }
 0x320   :  { %2395 = vmatprep.subr.bf16.mxu0 %v2865_v20 }
 0x323   :  { %2396 = vmatpush3.bf16.msra.mxu0 %v2683_v2 }
 0x324   :  { %2397 = vmatprep.subr.bf16.mxu0 %v2865_v20 }
 0x327   :  { %2398 = vmatpush3.bf16.msra.mxu0 %v2684_v3 }
 0x328   :  { %2399 = vmatprep.subr.bf16.mxu0 %v2865_v20 }
 0x32b   :  { %2400 = vmatpush3.bf16.msra.mxu0 %v2685_v4 }
 0x32c   :  { %2401 = vmatprep.subr.bf16.mxu0 %v2865_v20 }
 0x32f   :  { %2402 = vmatpush3.bf16.msra.mxu0 %v2686_v5 }
 0x330   :  { %2403 = vmatprep.subr.bf16.mxu0 %v2865_v20 }
 0x333   :  { %2404 = vmatpush3.bf16.msra.mxu0 %v2687_v15 }
 0x334   :  { %2405 = vmatprep.subr.bf16.mxu0 %v2865_v20 }
 0x337   :  { %2406 = vmatpush3.bf16.msra.mxu0 %v2688_v16 }
 0x3da   :  { %v1680_v7 = vpop.f32.mrf.mxu0 }
 0x3db   :  { %v1681_v8 = vadd.f32 %v2211_v6, %v1680_v7 }
 0x3dc   :  { %v2369_v9 = vpop.f32.mrf.mxu0 }
 0x3dd   :  { %v1686_v10 = vmax.f32 %v1681_v8, 0.0 }
 0x3de   :  { %v1683_v11 = vpop.f32.mrf.mxu0 }
 0x3df   :  { %v1687_v12 = vmin.f32 %v1686_v10, 6.0 }
 0x3e0   :  { %v2370_v13 = vpop.f32.mrf.mxu0 }
 0x3e1   :  { %v1688_v14 = vpack.c.bf16 %v1687_v12, %v1687_v12 }
 0x3e3   :  { %2388 = vmatmul.mubr.bf16.vlgmr.msra.gmra.mxu1 %v1688_v14 }
 0x3e4   :  { %2427 = vmatprep.mubr.msk.bf16.mxu1 %vm2866_vm4, %v2865_v20  ;;  %2412 = vmatpush3.bf16.msra.mxu1 %v2689_v17 }
 0x3e5   :  { %2413 = vmatprep.subr.bf16.mxu1 %v2865_v20 }
 0x3e8   :  { %2414 = vmatpush3.bf16.msra.mxu1 %v2690_v18 }
 0x3e9   :  { %2415 = vmatprep.subr.bf16.mxu1 %v2865_v20 }
 0x3ec   :  { %2416 = vmatpush3.bf16.msra.mxu1 %v2691_v19 }
 0x3ed   :  { %2417 = vmatprep.subr.bf16.mxu1 %v2865_v20 }
 0x3f0   :  { %2418 = vmatpush3.bf16.msra.mxu1 %v2692_v21 }
 0x3f1   :  { %2419 = vmatprep.subr.bf16.mxu1 %v2865_v20 }
 0x3f4   :  { %2420 = vmatpush3.bf16.msra.mxu1 %v2693_v22 }
 0x3f5   :  { %2421 = vmatprep.subr.bf16.mxu1 %v2865_v20 }
 0x3f8   :  { %2422 = vmatpush3.bf16.msra.mxu1 %v2694_v23 }
 0x3f9   :  { %2423 = vmatprep.subr.bf16.mxu1 %v2865_v20 }
 0x3fc   :  { %2424 = vmatpush3.bf16.msra.mxu1 %v2695_v36 }
 0x3fd   :  { %2425 = vmatprep.subr.bf16.mxu1 %v2865_v20 }
 0x400   :  { %2426 = vmatpush3.bf16.msra.mxu1 %v2696_v37 }
 0x4a3   :  { %v1794_v25 = vpop.f32.mrf.mxu1 }
 0x4a4   :  { %v1795_v26 = vadd.f32 %v2220_v24, %v1794_v25 }
 0x4a5   :  { %v2389_v27 = vpop.f32.mrf.mxu1 }
 0x4a6   :  { %v1800_v28 = vmax.f32 %v1795_v26, 0.0 }
 0x4a7   :  { %v1797_v31 = vpop.f32.mrf.mxu1 }
 0x4a8   :  { %v1801_v33 = vmin.f32 %v1800_v28, 6.0 }
 0x4a9   :  { %v2390_v34 = vpop.f32.mrf.mxu1 }
 0x4aa   :  { %v1802_v35 = vpack.c.bf16 %v1801_v33, %v1801_v33 }
 0x4ac   :  { %2408 = vmatmul.mubr.bf16.vlgmr.msra.gmra.mxu0 %v1802_v35 }
 0x56c   :  { %v1908_v39 = vpop.f32.mrf.mxu0 }
 0x56d   :  { %v1909_v40 = vadd.f32 %v2229_v38, %v1908_v39 }
 0x56e   :  { %v2409_v41 = vpop.f32.mrf.mxu0 }
 0x56f   :  { %v1914_v42 = vmax.f32 %v1909_v40, 0.0 }
 0x570   :  { %v1911_v43 = vpop.f32.mrf.mxu0 }
 0x571   :  { %v1915_v44 = vmin.f32 %v1914_v42, 6.0 }
 0x572   :  { %v2410_v45 = vpop.f32.mrf.mxu0 }
 0x573   :  { %v1916_v46 = vpack.c.bf16 %v1915_v44, %v1915_v44 }
 0x575   :  { %2428 = vmatmul.mubr.bf16.vlgmr.msra.gmra.mxu1 %v1916_v46 }
 0x635   :  { %v2022_v20 = vpop.f32.mrf.mxu1 }
 0x636   :  { %v2023_v29 = vadd.f32 %v2238_v30, %v2022_v20 }
 0x637   :  { %v2429_v32 = vpop.f32.mrf.mxu1 }
 0x638   :  { %v2028_v47 = vsub.f32 0.0, %v2023_v29 }
 0x639   :  { %v2025_v48 = vpop.f32.mrf.mxu1 }
 0x63a   :  { %v2029_v49 = vmul.f32 1.442695, %v2028_v47 }
 0x63b   :  { %v2430_v50 = vpop.f32.mrf.mxu1 }
 0x63c   :  { %2697 = vpow2.f32 %v2029_v49 }
 0x649   :  { %v2698_v51 = vpop.eup %2697 }
 0x64a   :  { %v2031_v52 = vadd.f32 1.0, %v2698_v51 }
 0x64c   :  { %2699 = vrcp.f32 %v2031_v52 }
 0x659   :  { %v2700_v53 = vpop.eup %2699 }
 0x65a   :  { %2035 = vst.msk [vmem:[%s3121_s15] sm:$0xff] %vm2034_vm5, %v2700_v53 }
 0x65b   :  { %2040 = vsyncpa [#allocation4], 1 }
 0x65c   :  { %2041 = vsyncpa [#allocation6], 1 }
 0x65d   :  { %2042 = vsyncpa [#allocation9], 1 }
 0x65e   :  { %2043 = vsyncpa [#allocation12], 1 }

</bundles_post_ra>
